<compile_context>
chip_gen: v7x
topology: tpu7x:2x2x1
jax: 0.10.0
libtpu: 0.0.40
codegen_flags: <defaults>
</compile_context>

<pallas_src>
import functools

import jax
import jax.numpy as jnp
from jax.experimental import pallas as pl
from jax.experimental.pallas import tpu as pltpu


# ----------------------------------------------------------------------------
# Fused kernel: grid = (T // Tb,), sequential over time blocks.  Per grid step:
# Tb timesteps of all L LSTM layers; FC + LogSoftmax epilogue on the last step.
# ----------------------------------------------------------------------------
def _text_classifier_kernel(*refs, num_layers, hidden_size, time_block):
    # refs = (x_proj, h0, c0,
    #         whh_0..whh_{L-1}, wih_1..wih_{L-1}, b_1..b_{L-1},
    #         fc_w_t, fc_b,                    # inputs
    #         logps, hn, cn)                   # outputs
    L, H, Tb = num_layers, hidden_size, time_block
    x_ref, h0_ref, c0_ref = refs[0], refs[1], refs[2]
    off = 3
    whh_refs = refs[off:off + L]; off += L
    wih_refs = refs[off:off + (L - 1)]; off += (L - 1)
    b_refs = refs[off:off + (L - 1)]; off += (L - 1)
    wfc_ref, bfc_ref = refs[off], refs[off + 1]
    logps_ref, hn_ref, cn_ref = refs[off + 2], refs[off + 3], refs[off + 4]

    tb = pl.program_id(0)

    # hn/cn outputs double as the recurrent carry (constant index_map keeps
    # them VMEM-resident across grid steps; HBM writeback happens once at end).
    @pl.when(tb == 0)
    def _init():
        hn_ref[...] = h0_ref[...]
        cn_ref[...] = c0_ref[...]

    # Block-invariant weights: load from VMEM to vregs once, outside the loop.
    whh = tuple(whh_refs[l][...] for l in range(L))          # each (H, 4H)
    wih = tuple(wih_refs[l][...] for l in range(L - 1))      # each (H, 4H)
    bias = tuple(b_refs[l][...] for l in range(L - 1))       # each (1, 4H)

    hs0 = tuple(hn_ref[l] for l in range(L))
    cs0 = tuple(cn_ref[l] for l in range(L))

    def cell(gates, c_prev):
        # i/f/o pre-activations were pre-scaled by 0.5 in the wrapper, so one
        # full-width tanh (single EUP pass over (B, 4H)) plus a cheap VPU
        # affine fixup implements sigmoid there: sigmoid(z) = 0.5*tanh(z/2)+0.5
        act = jnp.tanh(gates)
        i_g = 0.5 * act[:, 0 * H:1 * H] + 0.5
        f_g = 0.5 * act[:, 1 * H:2 * H] + 0.5
        g_g = act[:, 2 * H:3 * H]
        o_g = 0.5 * act[:, 3 * H:4 * H] + 0.5
        c_new = f_g * c_prev + i_g * g_g
        h_new = o_g * jnp.tanh(c_new)
        return h_new, c_new

    def step(t, carry):
        hs, cs = carry
        new_hs, new_cs = [], []
        # Layer 0: input projection (+ bias) hoisted out of the recurrence;
        # only the recurrent matmul stays on the serial critical path.
        gates = x_ref[t] + jnp.dot(hs[0], whh[0],
                                   preferred_element_type=jnp.float32)
        h_new, c_new = cell(gates, cs[0])
        new_hs.append(h_new)
        new_cs.append(c_new)
        for l in range(1, L):
            gates = (jnp.dot(new_hs[l - 1], wih[l - 1],
                             preferred_element_type=jnp.float32)
                     + jnp.dot(hs[l], whh[l],
                               preferred_element_type=jnp.float32)
                     + bias[l - 1])
            h_new, c_new = cell(gates, cs[l])
            new_hs.append(h_new)
            new_cs.append(c_new)
            # TODO(synk): inter-layer LSTM dropout is train-time only; eval
            # semantics are implemented here (matches module.eval()).
        return tuple(new_hs), tuple(new_cs)

    unroll = True if Tb <= 16 else 8
    hs, cs = jax.lax.fori_loop(0, Tb, step, (hs0, cs0), unroll=unroll)

    for l in range(L):
        hn_ref[l] = hs[l]
        cn_ref[l] = cs[l]

    # FC + LogSoftmax(dim=0) epilogue on the last time block's top-layer state.
    @pl.when(tb == pl.num_programs(0) - 1)
    def _final():
        logits = (jnp.dot(hs[L - 1], wfc_ref[...],
                          preferred_element_type=jnp.float32)
                  + bfc_ref[...])                                    # (B, O)
        m = jnp.max(logits, axis=0, keepdims=True)
        lse = jnp.log(jnp.sum(jnp.exp(logits - m), axis=0, keepdims=True)) + m
        logps_ref[...] = (logits - lse).astype(logps_ref.dtype)


def text_classifier_forward(x_proj, h0, c0, whh_ts, wih_ts, gate_bs,
                            fc_w_t, fc_b2, time_block=None):
    """x_proj: (T,B,4H) layer-0 gate pre-activations (hoisted input projection,
    bias folded in, i/f/o columns pre-scaled by 0.5); h0/c0: (L,B,H);
    whh_ts[l]: (H,4H); wih_ts[l-1] for l>=1: (H,4H); gate_bs[l-1]: (1,4H);
    fc_w_t: (H,O); fc_b2: (1,O).  Returns (logps (B,O), hn, cn)."""
    T, B, G = x_proj.shape
    L, _, H = h0.shape
    O = fc_w_t.shape[1]

    if time_block is None:
        # Amortize the ~0.35us fixed per-grid-step overhead over as many
        # timesteps as possible.  Block must divide T (no ragged tail).
        # TODO(synk): derive the cap from per-generation VMEM budget (v7x has
        # half the VMEM of v5e/v6e) and raise vmem_limit_bytes if needed.
        cap = 128
        time_block = 1
        for d in range(1, min(T, cap) + 1):
            if T % d == 0:
                time_block = d
    assert T % time_block == 0
    num_blocks = T // time_block

    kernel = functools.partial(_text_classifier_kernel,
                               num_layers=L, hidden_size=H,
                               time_block=time_block)

    # TODO(synk): for v7x at larger H, mark the weight/bias/h0/c0 specs
    # pipeline_mode=pl.Buffered(1) (grid-invariant, no need to double-buffer).
    in_specs = [
        pl.BlockSpec((time_block, B, G), lambda tb: (tb, 0, 0)),   # x_proj blk
        pl.BlockSpec((L, B, H), lambda tb: (0, 0, 0)),             # h0
        pl.BlockSpec((L, B, H), lambda tb: (0, 0, 0)),             # c0
    ]
    inputs = [x_proj, h0, c0]
    for w in whh_ts:                                               # (H, 4H)
        in_specs.append(pl.BlockSpec(w.shape, lambda tb: (0, 0)))
        inputs.append(w)
    for w in wih_ts:                                               # (H, 4H)
        in_specs.append(pl.BlockSpec(w.shape, lambda tb: (0, 0)))
        inputs.append(w)
    for b in gate_bs:                                              # (1, 4H)
        in_specs.append(pl.BlockSpec(b.shape, lambda tb: (0, 0)))
        inputs.append(b)
    in_specs.append(pl.BlockSpec(fc_w_t.shape, lambda tb: (0, 0)))  # (H, O)
    in_specs.append(pl.BlockSpec(fc_b2.shape, lambda tb: (0, 0)))   # (1, O)
    inputs += [fc_w_t, fc_b2]

    out_shape = (jax.ShapeDtypeStruct((B, O), jnp.float32),
                 jax.ShapeDtypeStruct((L, B, H), jnp.float32),
                 jax.ShapeDtypeStruct((L, B, H), jnp.float32))
    out_specs = (pl.BlockSpec((B, O), lambda tb: (0, 0)),
                 pl.BlockSpec((L, B, H), lambda tb: (0, 0, 0)),
                 pl.BlockSpec((L, B, H), lambda tb: (0, 0, 0)))

    return pl.pallas_call(
        kernel,
        out_shape=out_shape,
        grid_spec=pltpu.PrefetchScalarGridSpec(
            num_scalar_prefetch=0,
            grid=(num_blocks,),
            in_specs=in_specs,
            out_specs=out_specs,
        ),
        # Time is a serial recurrence -> "arbitrary" (hn/cn carry-in-output
        # requires it).  TODO(synk): on v7x, add a leading "parallel" batch
        # grid axis once B >= 16 so the second TensorCore gets half the batch.
        compiler_params=pltpu.CompilerParams(
            dimension_semantics=("arbitrary",)),
    )(*inputs)


# ----------------------------------------------------------------------------
# TextClassifier in JAX/Pallas
# ----------------------------------------------------------------------------
class TextClassifierPallas:
    def __init__(self, vocab_size, embed_size, lstm_size, output_size,
                 lstm_layers=1, dropout=0.1, key=None):
        self.vocab_size = vocab_size
        self.embed_size = embed_size
        self.lstm_size = lstm_size
        self.output_size = output_size
        self.lstm_layers = lstm_layers
        self.dropout = dropout  # eval-time semantics; dropout unused in forward

        key = key if key is not None else jax.random.PRNGKey(0)
        ks = jax.random.split(key, 2 + 4 * lstm_layers + 2)
        k_iter = iter(ks)

        # nn.Embedding: N(0, 1)
        self.embedding = jax.random.normal(next(k_iter),
                                           (vocab_size, embed_size),
                                           dtype=jnp.float32)

        # nn.LSTM params: U(-1/sqrt(H), 1/sqrt(H)), PyTorch layout [i,f,g,o].
        bound = 1.0 / jnp.sqrt(jnp.float32(lstm_size))
        self.lstm_params = []
        for layer in range(lstm_layers):
            in_size = embed_size if layer == 0 else lstm_size
            w_ih = jax.random.uniform(next(k_iter), (4 * lstm_size, in_size),
                                      minval=-bound, maxval=bound,
                                      dtype=jnp.float32)
            w_hh = jax.random.uniform(next(k_iter), (4 * lstm_size, lstm_size),
                                      minval=-bound, maxval=bound,
                                      dtype=jnp.float32)
            b_ih = jax.random.uniform(next(k_iter), (4 * lstm_size,),
                                      minval=-bound, maxval=bound,
                                      dtype=jnp.float32)
            b_hh = jax.random.uniform(next(k_iter), (4 * lstm_size,),
                                      minval=-bound, maxval=bound,
                                      dtype=jnp.float32)
            self.lstm_params.append((w_ih, w_hh, b_ih, b_hh))

        # nn.Linear: U(-1/sqrt(in), 1/sqrt(in))
        fc_bound = 1.0 / jnp.sqrt(jnp.float32(lstm_size))
        self.fc_w = jax.random.uniform(next(k_iter), (output_size, lstm_size),
                                       minval=-fc_bound, maxval=fc_bound,
                                       dtype=jnp.float32)
        self.fc_b = jax.random.uniform(next(k_iter), (output_size,),
                                       minval=-fc_bound, maxval=fc_bound,
                                       dtype=jnp.float32)

        # Kernel-format params (hoisted out of the time loop):
        #  * transposed, lane-dense (.., 4H) weights;
        #  * i/f/o columns pre-scaled by 0.5 so the kernel's single tanh pass
        #    implements sigmoid via 0.5*tanh(z/2)+0.5;
        #  * biases pre-summed (b_ih + b_hh); layer-0 bias folded into the
        #    hoisted input projection.
        H = lstm_size
        gate_scale = jnp.concatenate([
            jnp.full((2 * H,), 0.5, jnp.float32),    # i, f
            jnp.ones((H,), jnp.float32),             # g (tanh, unscaled)
            jnp.full((H,), 0.5, jnp.float32),        # o
        ])
        self.whh_ts = []          # per layer: (H, 4H)
        self.wih_ts_upper = []    # layers 1..L-1: (H, 4H)
        self.gate_bs_upper = []   # layers 1..L-1: (1, 4H)
        for layer, (w_ih, w_hh, b_ih, b_hh) in enumerate(self.lstm_params):
            self.whh_ts.append(w_hh.T * gate_scale[None, :])
            if layer == 0:
                self.wih0_t = w_ih.T * gate_scale[None, :]          # (E, 4H)
                self.b0 = ((b_ih + b_hh) * gate_scale).reshape(1, 4 * H)
            else:
                self.wih_ts_upper.append(w_ih.T * gate_scale[None, :])
                self.gate_bs_upper.append(
                    ((b_ih + b_hh) * gate_scale).reshape(1, 4 * H))
        self.fc_w_t = self.fc_w.T                                   # (H, O)
        self.fc_b2 = self.fc_b.reshape(1, output_size)              # (1, O)

    def init_hidden(self, batch_size):
        z = jnp.zeros((self.lstm_layers, batch_size, self.lstm_size),
                      jnp.float32)
        return (z, z)

    def forward(self, nn_input, hidden_state):
        # nn_input: (T, B) int32 token ids
        h0_all, c0_all = hidden_state

        # TODO(synk): embedding gather kept as plain-JAX glue; for real vocab
        # sizes the table does not fit VMEM, so an in-kernel gather would need
        # a manual DMA-gather path.
        embeds = jnp.take(self.embedding, nn_input, axis=0)         # (T, B, E)

        # Hoisted layer-0 input projection: one matmul with M = T*B (fills the
        # MXU) instead of T tiny matmuls inside the serial recurrence; bias
        # folded in.  Full-f32 precision to match the in-kernel MXU path.
        x_proj = jnp.einsum('tbe,ef->tbf', embeds, self.wih0_t,
                            precision=jax.lax.Precision.HIGHEST) + self.b0

        logps, hn, cn = text_classifier_forward(
            x_proj, h0_all, c0_all,
            self.whh_ts, self.wih_ts_upper, self.gate_bs_upper,
            self.fc_w_t, self.fc_b2)
        return logps, (hn, cn)


# ----------------------------------------------------------------------------
# Pure-JAX reference (same math, no Pallas) for a correctness check.
# ----------------------------------------------------------------------------
def reference_forward(model, nn_input, hidden_state):
    H = model.lstm_size
    h_all, c_all = hidden_state
    x = jnp.take(model.embedding, nn_input, axis=0)
    hs, cs = [], []
    for layer in range(model.lstm_layers):
        w_ih, w_hh, b_ih, b_hh = model.lstm_params[layer]
        h = h_all[layer]
        c = c_all[layer]
        outs = []
        for t in range(x.shape[0]):
            gates = x[t] @ w_ih.T + h @ w_hh.T + b_ih + b_hh
            i_g = jax.nn.sigmoid(gates[:, 0 * H:1 * H])
            f_g = jax.nn.sigmoid(gates[:, 1 * H:2 * H])
            g_g = jnp.tanh(gates[:, 2 * H:3 * H])
            o_g = jax.nn.sigmoid(gates[:, 3 * H:4 * H])
            c = f_g * c + i_g * g_g
            h = o_g * jnp.tanh(c)
            outs.append(h)
        x = jnp.stack(outs, axis=0)
        hs.append(h)
        cs.append(c)
    out = x[-1] @ model.fc_w.T + model.fc_b
    logps = jax.nn.log_softmax(out, axis=0)
    return logps, (jnp.stack(hs, axis=0), jnp.stack(cs, axis=0))


if __name__ == "__main__":
    # Small shapes consistent with the module's forward:
    # tokens (seq_len=8, batch=8), vocab=50, embed=32, lstm=32, output=5, 2 layers.
    vocab_size, embed_size, lstm_size, output_size = 50, 32, 32, 5
    seq_len, batch = 8, 8

    key = jax.random.PRNGKey(0)
    k_tok, k_model = jax.random.split(key)

    model = TextClassifierPallas(vocab_size, embed_size, lstm_size, output_size,
                                 lstm_layers=2, dropout=0.2, key=k_model)

    nn_input = jax.random.randint(k_tok, (seq_len, batch), 0, vocab_size,
                                  dtype=jnp.int32)
    hidden = model.init_hidden(batch)

    logps, new_hidden = model.forward(nn_input, hidden)
    jax.block_until_ready((logps, new_hidden))

    assert logps.shape == (batch, output_size)
    assert new_hidden[0].shape == (2, batch, lstm_size)
    assert new_hidden[1].shape == (2, batch, lstm_size)

    # Numerical check against the pure-JAX reference.
    ref_logps, (ref_hn, ref_cn) = reference_forward(model, nn_input, hidden)
    assert jnp.allclose(logps, ref_logps, atol=1e-3, rtol=1e-3)
    assert jnp.allclose(new_hidden[0], ref_hn, atol=1e-3, rtol=1e-3)
    assert jnp.allclose(new_hidden[1], ref_cn, atol=1e-3, rtol=1e-3)

    print("KERNEL_OK")
</pallas_src>

<mosaic_0001>
module attributes {stable_mosaic.version = 11 : i64} {
  func.func @_text_classifier_kernel(%arg0: i32, %arg1: memref<8x8x128xf32, #tpu.memory_space<vmem>>, %arg2: memref<2x8x32xf32, #tpu.memory_space<vmem>>, %arg3: memref<2x8x32xf32, #tpu.memory_space<vmem>>, %arg4: memref<32x128xf32, #tpu.memory_space<vmem>>, %arg5: memref<32x128xf32, #tpu.memory_space<vmem>>, %arg6: memref<32x128xf32, #tpu.memory_space<vmem>>, %arg7: memref<1x128xf32, #tpu.memory_space<vmem>>, %arg8: memref<32x5xf32, #tpu.memory_space<vmem>>, %arg9: memref<1x5xf32, #tpu.memory_space<vmem>>, %arg10: memref<8x5xf32, #tpu.memory_space<vmem>>, %arg11: memref<2x8x32xf32, #tpu.memory_space<vmem>>, %arg12: memref<2x8x32xf32, #tpu.memory_space<vmem>>) attributes {dimension_semantics = [#tpu.dimension_semantics<arbitrary>], iteration_bounds = array<i64: 1>, scalar_prefetch = 0 : i64, scratch_operands = 0 : i64, tpu.core_type = #tpu.core_type<tc>, window_params = [{transform_indices = @transform_0, window_bounds = array<i64: 8, 8, 128>}, {pipeline_mode = #tpu.pipeline_mode<synchronous>, transform_indices = @transform_1, window_bounds = array<i64: 2, 8, 32>}, {pipeline_mode = #tpu.pipeline_mode<synchronous>, transform_indices = @transform_2, window_bounds = array<i64: 2, 8, 32>}, {pipeline_mode = #tpu.pipeline_mode<synchronous>, transform_indices = @transform_3, window_bounds = array<i64: 32, 128>}, {pipeline_mode = #tpu.pipeline_mode<synchronous>, transform_indices = @transform_4, window_bounds = array<i64: 32, 128>}, {pipeline_mode = #tpu.pipeline_mode<synchronous>, transform_indices = @transform_5, window_bounds = array<i64: 32, 128>}, {pipeline_mode = #tpu.pipeline_mode<synchronous>, transform_indices = @transform_6, window_bounds = array<i64: 1, 128>}, {pipeline_mode = #tpu.pipeline_mode<synchronous>, transform_indices = @transform_7, window_bounds = array<i64: 32, 5>}, {pipeline_mode = #tpu.pipeline_mode<synchronous>, transform_indices = @transform_8, window_bounds = array<i64: 1, 5>}, {pipeline_mode = #tpu.pipeline_mode<synchronous>, transform_indices = @transform_9, window_bounds = array<i64: 8, 5>}, {pipeline_mode = #tpu.pipeline_mode<synchronous>, transform_indices = @transform_10, window_bounds = array<i64: 2, 8, 32>}, {pipeline_mode = #tpu.pipeline_mode<synchronous>, transform_indices = @transform_11, window_bounds = array<i64: 2, 8, 32>}]} {
    %c0_i32 = arith.constant 0 : i32
    %0 = arith.cmpi eq, %arg0, %c0_i32 : i32
    %1 = arith.extui %0 : i1 to i32
    %c0_i32_0 = arith.constant 0 : i32
    %2 = arith.cmpi ne, %1, %c0_i32_0 : i32
    scf.if %2 {
      %c0_169 = arith.constant 0 : index
      %c0_170 = arith.constant 0 : index
      %c0_171 = arith.constant 0 : index
      %462 = vector.load %arg2[%c0_169, %c0_170, %c0_171] : memref<2x8x32xf32, #tpu.memory_space<vmem>>, vector<2x8x32xf32>
      %c0_172 = arith.constant 0 : index
      %c0_173 = arith.constant 0 : index
      %c0_174 = arith.constant 0 : index
      %463 = vector.load %arg11[%c0_172, %c0_173, %c0_174] : memref<2x8x32xf32, #tpu.memory_space<vmem>>, vector<2x8x32xf32>
      tpu.vector_store %arg11[%c0_172, %c0_173, %c0_174], %462 {strides = array<i32>} : memref<2x8x32xf32, #tpu.memory_space<vmem>>, vector<2x8x32xf32>,
      %c0_175 = arith.constant 0 : index
      %c0_176 = arith.constant 0 : index
      %c0_177 = arith.constant 0 : index
      %464 = vector.load %arg3[%c0_175, %c0_176, %c0_177] : memref<2x8x32xf32, #tpu.memory_space<vmem>>, vector<2x8x32xf32>
      %c0_178 = arith.constant 0 : index
      %c0_179 = arith.constant 0 : index
      %c0_180 = arith.constant 0 : index
      %465 = vector.load %arg12[%c0_178, %c0_179, %c0_180] : memref<2x8x32xf32, #tpu.memory_space<vmem>>, vector<2x8x32xf32>
      tpu.vector_store %arg12[%c0_178, %c0_179, %c0_180], %464 {strides = array<i32>} : memref<2x8x32xf32, #tpu.memory_space<vmem>>, vector<2x8x32xf32>,
    } else {
    }
    %c0 = arith.constant 0 : index
    %c0_1 = arith.constant 0 : index
    %3 = vector.load %arg4[%c0, %c0_1] : memref<32x128xf32, #tpu.memory_space<vmem>>, vector<32x128xf32>
    %c0_2 = arith.constant 0 : index
    %c0_3 = arith.constant 0 : index
    %4 = vector.load %arg5[%c0_2, %c0_3] : memref<32x128xf32, #tpu.memory_space<vmem>>, vector<32x128xf32>
    %c0_4 = arith.constant 0 : index
    %c0_5 = arith.constant 0 : index
    %5 = vector.load %arg6[%c0_4, %c0_5] : memref<32x128xf32, #tpu.memory_space<vmem>>, vector<32x128xf32>
    %c0_6 = arith.constant 0 : index
    %c0_7 = arith.constant 0 : index
    %6 = vector.load %arg7[%c0_6, %c0_7] : memref<1x128xf32, #tpu.memory_space<vmem>>, vector<1x128xf32>
    %c0_8 = arith.constant 0 : index
    %c0_9 = arith.constant 0 : index
    %c0_10 = arith.constant 0 : index
    %7 = vector.load %arg11[%c0_8, %c0_9, %c0_10] : memref<2x8x32xf32, #tpu.memory_space<vmem>>, vector<1x8x32xf32>
    %8 = vector.shape_cast %7 : vector<1x8x32xf32> to vector<8x32xf32>
    %c1 = arith.constant 1 : index
    %c0_11 = arith.constant 0 : index
    %c0_12 = arith.constant 0 : index
    %9 = vector.load %arg11[%c1, %c0_11, %c0_12] : memref<2x8x32xf32, #tpu.memory_space<vmem>>, vector<1x8x32xf32>
    %10 = vector.shape_cast %9 : vector<1x8x32xf32> to vector<8x32xf32>
    %c0_13 = arith.constant 0 : index
    %c0_14 = arith.constant 0 : index
    %c0_15 = arith.constant 0 : index
    %11 = vector.load %arg12[%c0_13, %c0_14, %c0_15] : memref<2x8x32xf32, #tpu.memory_space<vmem>>, vector<1x8x32xf32>
    %12 = vector.shape_cast %11 : vector<1x8x32xf32> to vector<8x32xf32>
    %c1_16 = arith.constant 1 : index
    %c0_17 = arith.constant 0 : index
    %c0_18 = arith.constant 0 : index
    %13 = vector.load %arg12[%c1_16, %c0_17, %c0_18] : memref<2x8x32xf32, #tpu.memory_space<vmem>>, vector<1x8x32xf32>
    %14 = vector.shape_cast %13 : vector<1x8x32xf32> to vector<8x32xf32>
    %c0_i32_19 = arith.constant 0 : i32
    %15 = arith.index_cast %c0_i32_19 : i32 to index
    %c0_20 = arith.constant 0 : index
    %c0_21 = arith.constant 0 : index
    %16 = vector.load %arg1[%15, %c0_20, %c0_21] : memref<8x8x128xf32, #tpu.memory_space<vmem>>, vector<1x8x128xf32>
    %17 = vector.shape_cast %16 : vector<1x8x128xf32> to vector<8x128xf32>
    %cst = arith.constant dense<0.000000e+00> : vector<8x128xf32>
    %18 = tpu.matmul %8, %3, %cst {dimension_numbers = #tpu.dot_dimension_numbers<[1], [0], [0], [1], [0, 0, 1, 1], [], []>} : vector<8x32xf32>, vector<32x128xf32>, vector<8x128xf32> -> vector<8x128xf32>
    %19 = arith.addf %17, %18 : vector<8x128xf32>
    %20 = math.tanh %19 : vector<8x128xf32>
    %21 = vector.extract_strided_slice %20 {offsets = [0, 0], sizes = [8, 32], strides = [1, 1]} : vector<8x128xf32> to vector<8x32xf32>
    %cst_22 = arith.constant 5.000000e-01 : f32
    %22 = vector.broadcast %cst_22 : f32 to vector<8x32xf32>
    %23 = arith.mulf %22, %21 : vector<8x32xf32>
    %cst_23 = arith.constant 5.000000e-01 : f32
    %24 = vector.broadcast %cst_23 : f32 to vector<8x32xf32>
    %25 = arith.addf %23, %24 : vector<8x32xf32>
    %26 = vector.extract_strided_slice %20 {offsets = [0, 32], sizes = [8, 32], strides = [1, 1]} : vector<8x128xf32> to vector<8x32xf32>
    %cst_24 = arith.constant 5.000000e-01 : f32
    %27 = vector.broadcast %cst_24 : f32 to vector<8x32xf32>
    %28 = arith.mulf %27, %26 : vector<8x32xf32>
    %cst_25 = arith.constant 5.000000e-01 : f32
    %29 = vector.broadcast %cst_25 : f32 to vector<8x32xf32>
    %30 = arith.addf %28, %29 : vector<8x32xf32>
    %31 = vector.extract_strided_slice %20 {offsets = [0, 64], sizes = [8, 32], strides = [1, 1]} : vector<8x128xf32> to vector<8x32xf32>
    %32 = vector.extract_strided_slice %20 {offsets = [0, 96], sizes = [8, 32], strides = [1, 1]} : vector<8x128xf32> to vector<8x32xf32>
    %cst_26 = arith.constant 5.000000e-01 : f32
    %33 = vector.broadcast %cst_26 : f32 to vector<8x32xf32>
    %34 = arith.mulf %33, %32 : vector<8x32xf32>
    %cst_27 = arith.constant 5.000000e-01 : f32
    %35 = vector.broadcast %cst_27 : f32 to vector<8x32xf32>
    %36 = arith.addf %34, %35 : vector<8x32xf32>
    %37 = arith.mulf %30, %12 : vector<8x32xf32>
    %38 = arith.mulf %25, %31 : vector<8x32xf32>
    %39 = arith.addf %37, %38 : vector<8x32xf32>
    %40 = math.tanh %39 : vector<8x32xf32>
    %41 = arith.mulf %36, %40 : vector<8x32xf32>
    %cst_28 = arith.constant dense<0.000000e+00> : vector<8x128xf32>
    %42 = tpu.matmul %41, %5, %cst_28 {dimension_numbers = #tpu.dot_dimension_numbers<[1], [0], [0], [1], [0, 0, 1, 1], [], []>} : vector<8x32xf32>, vector<32x128xf32>, vector<8x128xf32> -> vector<8x128xf32>
    %cst_29 = arith.constant dense<0.000000e+00> : vector<8x128xf32>
    %43 = tpu.matmul %10, %4, %cst_29 {dimension_numbers = #tpu.dot_dimension_numbers<[1], [0], [0], [1], [0, 0, 1, 1], [], []>} : vector<8x32xf32>, vector<32x128xf32>, vector<8x128xf32> -> vector<8x128xf32>
    %44 = arith.addf %42, %43 : vector<8x128xf32>
    %45 = vector.broadcast %6 : vector<1x128xf32> to vector<8x128xf32>
    %46 = arith.addf %44, %45 : vector<8x128xf32>
    %47 = math.tanh %46 : vector<8x128xf32>
    %48 = vector.extract_strided_slice %47 {offsets = [0, 0], sizes = [8, 32], strides = [1, 1]} : vector<8x128xf32> to vector<8x32xf32>
    %cst_30 = arith.constant 5.000000e-01 : f32
    %49 = vector.broadcast %cst_30 : f32 to vector<8x32xf32>
    %50 = arith.mulf %49, %48 : vector<8x32xf32>
    %cst_31 = arith.constant 5.000000e-01 : f32
    %51 = vector.broadcast %cst_31 : f32 to vector<8x32xf32>
    %52 = arith.addf %50, %51 : vector<8x32xf32>
    %53 = vector.extract_strided_slice %47 {offsets = [0, 32], sizes = [8, 32], strides = [1, 1]} : vector<8x128xf32> to vector<8x32xf32>
    %cst_32 = arith.constant 5.000000e-01 : f32
    %54 = vector.broadcast %cst_32 : f32 to vector<8x32xf32>
    %55 = arith.mulf %54, %53 : vector<8x32xf32>
    %cst_33 = arith.constant 5.000000e-01 : f32
    %56 = vector.broadcast %cst_33 : f32 to vector<8x32xf32>
    %57 = arith.addf %55, %56 : vector<8x32xf32>
    %58 = vector.extract_strided_slice %47 {offsets = [0, 64], sizes = [8, 32], strides = [1, 1]} : vector<8x128xf32> to vector<8x32xf32>
    %59 = vector.extract_strided_slice %47 {offsets = [0, 96], sizes = [8, 32], strides = [1, 1]} : vector<8x128xf32> to vector<8x32xf32>
    %cst_34 = arith.constant 5.000000e-01 : f32
    %60 = vector.broadcast %cst_34 : f32 to vector<8x32xf32>
    %61 = arith.mulf %60, %59 : vector<8x32xf32>
    %cst_35 = arith.constant 5.000000e-01 : f32
    %62 = vector.broadcast %cst_35 : f32 to vector<8x32xf32>
    %63 = arith.addf %61, %62 : vector<8x32xf32>
    %64 = arith.mulf %57, %14 : vector<8x32xf32>
    %65 = arith.mulf %52, %58 : vector<8x32xf32>
    %66 = arith.addf %64, %65 : vector<8x32xf32>
    %67 = math.tanh %66 : vector<8x32xf32>
    %68 = arith.mulf %63, %67 : vector<8x32xf32>
    %c1_i32 = arith.constant 1 : i32
    %69 = arith.index_cast %c1_i32 : i32 to index
    %c0_36 = arith.constant 0 : index
    %c0_37 = arith.constant 0 : index
    %70 = vector.load %arg1[%69, %c0_36, %c0_37] : memref<8x8x128xf32, #tpu.memory_space<vmem>>, vector<1x8x128xf32>
    %71 = vector.shape_cast %70 : vector<1x8x128xf32> to vector<8x128xf32>
    %cst_38 = arith.constant dense<0.000000e+00> : vector<8x128xf32>
    %72 = tpu.matmul %41, %3, %cst_38 {dimension_numbers = #tpu.dot_dimension_numbers<[1], [0], [0], [1], [0, 0, 1, 1], [], []>} : vector<8x32xf32>, vector<32x128xf32>, vector<8x128xf32> -> vector<8x128xf32>
    %73 = arith.addf %71, %72 : vector<8x128xf32>
    %74 = math.tanh %73 : vector<8x128xf32>
    %75 = vector.extract_strided_slice %74 {offsets = [0, 0], sizes = [8, 32], strides = [1, 1]} : vector<8x128xf32> to vector<8x32xf32>
    %cst_39 = arith.constant 5.000000e-01 : f32
    %76 = vector.broadcast %cst_39 : f32 to vector<8x32xf32>
    %77 = arith.mulf %76, %75 : vector<8x32xf32>
    %cst_40 = arith.constant 5.000000e-01 : f32
    %78 = vector.broadcast %cst_40 : f32 to vector<8x32xf32>
    %79 = arith.addf %77, %78 : vector<8x32xf32>
    %80 = vector.extract_strided_slice %74 {offsets = [0, 32], sizes = [8, 32], strides = [1, 1]} : vector<8x128xf32> to vector<8x32xf32>
    %cst_41 = arith.constant 5.000000e-01 : f32
    %81 = vector.broadcast %cst_41 : f32 to vector<8x32xf32>
    %82 = arith.mulf %81, %80 : vector<8x32xf32>
    %cst_42 = arith.constant 5.000000e-01 : f32
    %83 = vector.broadcast %cst_42 : f32 to vector<8x32xf32>
    %84 = arith.addf %82, %83 : vector<8x32xf32>
    %85 = vector.extract_strided_slice %74 {offsets = [0, 64], sizes = [8, 32], strides = [1, 1]} : vector<8x128xf32> to vector<8x32xf32>
    %86 = vector.extract_strided_slice %74 {offsets = [0, 96], sizes = [8, 32], strides = [1, 1]} : vector<8x128xf32> to vector<8x32xf32>
    %cst_43 = arith.constant 5.000000e-01 : f32
    %87 = vector.broadcast %cst_43 : f32 to vector<8x32xf32>
    %88 = arith.mulf %87, %86 : vector<8x32xf32>
    %cst_44 = arith.constant 5.000000e-01 : f32
    %89 = vector.broadcast %cst_44 : f32 to vector<8x32xf32>
    %90 = arith.addf %88, %89 : vector<8x32xf32>
    %91 = arith.mulf %84, %39 : vector<8x32xf32>
    %92 = arith.mulf %79, %85 : vector<8x32xf32>
    %93 = arith.addf %91, %92 : vector<8x32xf32>
    %94 = math.tanh %93 : vector<8x32xf32>
    %95 = arith.mulf %90, %94 : vector<8x32xf32>
    %cst_45 = arith.constant dense<0.000000e+00> : vector<8x128xf32>
    %96 = tpu.matmul %95, %5, %cst_45 {dimension_numbers = #tpu.dot_dimension_numbers<[1], [0], [0], [1], [0, 0, 1, 1], [], []>} : vector<8x32xf32>, vector<32x128xf32>, vector<8x128xf32> -> vector<8x128xf32>
    %cst_46 = arith.constant dense<0.000000e+00> : vector<8x128xf32>
    %97 = tpu.matmul %68, %4, %cst_46 {dimension_numbers = #tpu.dot_dimension_numbers<[1], [0], [0], [1], [0, 0, 1, 1], [], []>} : vector<8x32xf32>, vector<32x128xf32>, vector<8x128xf32> -> vector<8x128xf32>
    %98 = arith.addf %96, %97 : vector<8x128xf32>
    %99 = vector.broadcast %6 : vector<1x128xf32> to vector<8x128xf32>
    %100 = arith.addf %98, %99 : vector<8x128xf32>
    %101 = math.tanh %100 : vector<8x128xf32>
    %102 = vector.extract_strided_slice %101 {offsets = [0, 0], sizes = [8, 32], strides = [1, 1]} : vector<8x128xf32> to vector<8x32xf32>
    %cst_47 = arith.constant 5.000000e-01 : f32
    %103 = vector.broadcast %cst_47 : f32 to vector<8x32xf32>
    %104 = arith.mulf %103, %102 : vector<8x32xf32>
    %cst_48 = arith.constant 5.000000e-01 : f32
    %105 = vector.broadcast %cst_48 : f32 to vector<8x32xf32>
    %106 = arith.addf %104, %105 : vector<8x32xf32>
    %107 = vector.extract_strided_slice %101 {offsets = [0, 32], sizes = [8, 32], strides = [1, 1]} : vector<8x128xf32> to vector<8x32xf32>
    %cst_49 = arith.constant 5.000000e-01 : f32
    %108 = vector.broadcast %cst_49 : f32 to vector<8x32xf32>
    %109 = arith.mulf %108, %107 : vector<8x32xf32>
    %cst_50 = arith.constant 5.000000e-01 : f32
    %110 = vector.broadcast %cst_50 : f32 to vector<8x32xf32>
    %111 = arith.addf %109, %110 : vector<8x32xf32>
    %112 = vector.extract_strided_slice %101 {offsets = [0, 64], sizes = [8, 32], strides = [1, 1]} : vector<8x128xf32> to vector<8x32xf32>
    %113 = vector.extract_strided_slice %101 {offsets = [0, 96], sizes = [8, 32], strides = [1, 1]} : vector<8x128xf32> to vector<8x32xf32>
    %cst_51 = arith.constant 5.000000e-01 : f32
    %114 = vector.broadcast %cst_51 : f32 to vector<8x32xf32>
    %115 = arith.mulf %114, %113 : vector<8x32xf32>
    %cst_52 = arith.constant 5.000000e-01 : f32
    %116 = vector.broadcast %cst_52 : f32 to vector<8x32xf32>
    %117 = arith.addf %115, %116 : vector<8x32xf32>
    %118 = arith.mulf %111, %66 : vector<8x32xf32>
    %119 = arith.mulf %106, %112 : vector<8x32xf32>
    %120 = arith.addf %118, %119 : vector<8x32xf32>
    %121 = math.tanh %120 : vector<8x32xf32>
    %122 = arith.mulf %117, %121 : vector<8x32xf32>
    %c2_i32 = arith.constant 2 : i32
    %123 = arith.index_cast %c2_i32 : i32 to index
    %c0_53 = arith.constant 0 : index
    %c0_54 = arith.constant 0 : index
    %124 = vector.load %arg1[%123, %c0_53, %c0_54] : memref<8x8x128xf32, #tpu.memory_space<vmem>>, vector<1x8x128xf32>
    %125 = vector.shape_cast %124 : vector<1x8x128xf32> to vector<8x128xf32>
    %cst_55 = arith.constant dense<0.000000e+00> : vector<8x128xf32>
    %126 = tpu.matmul %95, %3, %cst_55 {dimension_numbers = #tpu.dot_dimension_numbers<[1], [0], [0], [1], [0, 0, 1, 1], [], []>} : vector<8x32xf32>, vector<32x128xf32>, vector<8x128xf32> -> vector<8x128xf32>
    %127 = arith.addf %125, %126 : vector<8x128xf32>
    %128 = math.tanh %127 : vector<8x128xf32>
    %129 = vector.extract_strided_slice %128 {offsets = [0, 0], sizes = [8, 32], strides = [1, 1]} : vector<8x128xf32> to vector<8x32xf32>
    %cst_56 = arith.constant 5.000000e-01 : f32
    %130 = vector.broadcast %cst_56 : f32 to vector<8x32xf32>
    %131 = arith.mulf %130, %129 : vector<8x32xf32>
    %cst_57 = arith.constant 5.000000e-01 : f32
    %132 = vector.broadcast %cst_57 : f32 to vector<8x32xf32>
    %133 = arith.addf %131, %132 : vector<8x32xf32>
    %134 = vector.extract_strided_slice %128 {offsets = [0, 32], sizes = [8, 32], strides = [1, 1]} : vector<8x128xf32> to vector<8x32xf32>
    %cst_58 = arith.constant 5.000000e-01 : f32
    %135 = vector.broadcast %cst_58 : f32 to vector<8x32xf32>
    %136 = arith.mulf %135, %134 : vector<8x32xf32>
    %cst_59 = arith.constant 5.000000e-01 : f32
    %137 = vector.broadcast %cst_59 : f32 to vector<8x32xf32>
    %138 = arith.addf %136, %137 : vector<8x32xf32>
    %139 = vector.extract_strided_slice %128 {offsets = [0, 64], sizes = [8, 32], strides = [1, 1]} : vector<8x128xf32> to vector<8x32xf32>
    %140 = vector.extract_strided_slice %128 {offsets = [0, 96], sizes = [8, 32], strides = [1, 1]} : vector<8x128xf32> to vector<8x32xf32>
    %cst_60 = arith.constant 5.000000e-01 : f32
    %141 = vector.broadcast %cst_60 : f32 to vector<8x32xf32>
    %142 = arith.mulf %141, %140 : vector<8x32xf32>
    %cst_61 = arith.constant 5.000000e-01 : f32
    %143 = vector.broadcast %cst_61 : f32 to vector<8x32xf32>
    %144 = arith.addf %142, %143 : vector<8x32xf32>
    %145 = arith.mulf %138, %93 : vector<8x32xf32>
    %146 = arith.mulf %133, %139 : vector<8x32xf32>
    %147 = arith.addf %145, %146 : vector<8x32xf32>
    %148 = math.tanh %147 : vector<8x32xf32>
    %149 = arith.mulf %144, %148 : vector<8x32xf32>
    %cst_62 = arith.constant dense<0.000000e+00> : vector<8x128xf32>
    %150 = tpu.matmul %149, %5, %cst_62 {dimension_numbers = #tpu.dot_dimension_numbers<[1], [0], [0], [1], [0, 0, 1, 1], [], []>} : vector<8x32xf32>, vector<32x128xf32>, vector<8x128xf32> -> vector<8x128xf32>
    %cst_63 = arith.constant dense<0.000000e+00> : vector<8x128xf32>
    %151 = tpu.matmul %122, %4, %cst_63 {dimension_numbers = #tpu.dot_dimension_numbers<[1], [0], [0], [1], [0, 0, 1, 1], [], []>} : vector<8x32xf32>, vector<32x128xf32>, vector<8x128xf32> -> vector<8x128xf32>
    %152 = arith.addf %150, %151 : vector<8x128xf32>
    %153 = vector.broadcast %6 : vector<1x128xf32> to vector<8x128xf32>
    %154 = arith.addf %152, %153 : vector<8x128xf32>
    %155 = math.tanh %154 : vector<8x128xf32>
    %156 = vector.extract_strided_slice %155 {offsets = [0, 0], sizes = [8, 32], strides = [1, 1]} : vector<8x128xf32> to vector<8x32xf32>
    %cst_64 = arith.constant 5.000000e-01 : f32
    %157 = vector.broadcast %cst_64 : f32 to vector<8x32xf32>
    %158 = arith.mulf %157, %156 : vector<8x32xf32>
    %cst_65 = arith.constant 5.000000e-01 : f32
    %159 = vector.broadcast %cst_65 : f32 to vector<8x32xf32>
    %160 = arith.addf %158, %159 : vector<8x32xf32>
    %161 = vector.extract_strided_slice %155 {offsets = [0, 32], sizes = [8, 32], strides = [1, 1]} : vector<8x128xf32> to vector<8x32xf32>
    %cst_66 = arith.constant 5.000000e-01 : f32
    %162 = vector.broadcast %cst_66 : f32 to vector<8x32xf32>
    %163 = arith.mulf %162, %161 : vector<8x32xf32>
    %cst_67 = arith.constant 5.000000e-01 : f32
    %164 = vector.broadcast %cst_67 : f32 to vector<8x32xf32>
    %165 = arith.addf %163, %164 : vector<8x32xf32>
    %166 = vector.extract_strided_slice %155 {offsets = [0, 64], sizes = [8, 32], strides = [1, 1]} : vector<8x128xf32> to vector<8x32xf32>
    %167 = vector.extract_strided_slice %155 {offsets = [0, 96], sizes = [8, 32], strides = [1, 1]} : vector<8x128xf32> to vector<8x32xf32>
    %cst_68 = arith.constant 5.000000e-01 : f32
    %168 = vector.broadcast %cst_68 : f32 to vector<8x32xf32>
    %169 = arith.mulf %168, %167 : vector<8x32xf32>
    %cst_69 = arith.constant 5.000000e-01 : f32
    %170 = vector.broadcast %cst_69 : f32 to vector<8x32xf32>
    %171 = arith.addf %169, %170 : vector<8x32xf32>
    %172 = arith.mulf %165, %120 : vector<8x32xf32>
    %173 = arith.mulf %160, %166 : vector<8x32xf32>
    %174 = arith.addf %172, %173 : vector<8x32xf32>
    %175 = math.tanh %174 : vector<8x32xf32>
    %176 = arith.mulf %171, %175 : vector<8x32xf32>
    %c3_i32 = arith.constant 3 : i32
    %177 = arith.index_cast %c3_i32 : i32 to index
    %c0_70 = arith.constant 0 : index
    %c0_71 = arith.constant 0 : index
    %178 = vector.load %arg1[%177, %c0_70, %c0_71] : memref<8x8x128xf32, #tpu.memory_space<vmem>>, vector<1x8x128xf32>
    %179 = vector.shape_cast %178 : vector<1x8x128xf32> to vector<8x128xf32>
    %cst_72 = arith.constant dense<0.000000e+00> : vector<8x128xf32>
    %180 = tpu.matmul %149, %3, %cst_72 {dimension_numbers = #tpu.dot_dimension_numbers<[1], [0], [0], [1], [0, 0, 1, 1], [], []>} : vector<8x32xf32>, vector<32x128xf32>, vector<8x128xf32> -> vector<8x128xf32>
    %181 = arith.addf %179, %180 : vector<8x128xf32>
    %182 = math.tanh %181 : vector<8x128xf32>
    %183 = vector.extract_strided_slice %182 {offsets = [0, 0], sizes = [8, 32], strides = [1, 1]} : vector<8x128xf32> to vector<8x32xf32>
    %cst_73 = arith.constant 5.000000e-01 : f32
    %184 = vector.broadcast %cst_73 : f32 to vector<8x32xf32>
    %185 = arith.mulf %184, %183 : vector<8x32xf32>
    %cst_74 = arith.constant 5.000000e-01 : f32
    %186 = vector.broadcast %cst_74 : f32 to vector<8x32xf32>
    %187 = arith.addf %185, %186 : vector<8x32xf32>
    %188 = vector.extract_strided_slice %182 {offsets = [0, 32], sizes = [8, 32], strides = [1, 1]} : vector<8x128xf32> to vector<8x32xf32>
    %cst_75 = arith.constant 5.000000e-01 : f32
    %189 = vector.broadcast %cst_75 : f32 to vector<8x32xf32>
    %190 = arith.mulf %189, %188 : vector<8x32xf32>
    %cst_76 = arith.constant 5.000000e-01 : f32
    %191 = vector.broadcast %cst_76 : f32 to vector<8x32xf32>
    %192 = arith.addf %190, %191 : vector<8x32xf32>
    %193 = vector.extract_strided_slice %182 {offsets = [0, 64], sizes = [8, 32], strides = [1, 1]} : vector<8x128xf32> to vector<8x32xf32>
    %194 = vector.extract_strided_slice %182 {offsets = [0, 96], sizes = [8, 32], strides = [1, 1]} : vector<8x128xf32> to vector<8x32xf32>
    %cst_77 = arith.constant 5.000000e-01 : f32
    %195 = vector.broadcast %cst_77 : f32 to vector<8x32xf32>
    %196 = arith.mulf %195, %194 : vector<8x32xf32>
    %cst_78 = arith.constant 5.000000e-01 : f32
    %197 = vector.broadcast %cst_78 : f32 to vector<8x32xf32>
    %198 = arith.addf %196, %197 : vector<8x32xf32>
    %199 = arith.mulf %192, %147 : vector<8x32xf32>
    %200 = arith.mulf %187, %193 : vector<8x32xf32>
    %201 = arith.addf %199, %200 : vector<8x32xf32>
    %202 = math.tanh %201 : vector<8x32xf32>
    %203 = arith.mulf %198, %202 : vector<8x32xf32>
    %cst_79 = arith.constant dense<0.000000e+00> : vector<8x128xf32>
    %204 = tpu.matmul %203, %5, %cst_79 {dimension_numbers = #tpu.dot_dimension_numbers<[1], [0], [0], [1], [0, 0, 1, 1], [], []>} : vector<8x32xf32>, vector<32x128xf32>, vector<8x128xf32> -> vector<8x128xf32>
    %cst_80 = arith.constant dense<0.000000e+00> : vector<8x128xf32>
    %205 = tpu.matmul %176, %4, %cst_80 {dimension_numbers = #tpu.dot_dimension_numbers<[1], [0], [0], [1], [0, 0, 1, 1], [], []>} : vector<8x32xf32>, vector<32x128xf32>, vector<8x128xf32> -> vector<8x128xf32>
    %206 = arith.addf %204, %205 : vector<8x128xf32>
    %207 = vector.broadcast %6 : vector<1x128xf32> to vector<8x128xf32>
    %208 = arith.addf %206, %207 : vector<8x128xf32>
    %209 = math.tanh %208 : vector<8x128xf32>
    %210 = vector.extract_strided_slice %209 {offsets = [0, 0], sizes = [8, 32], strides = [1, 1]} : vector<8x128xf32> to vector<8x32xf32>
    %cst_81 = arith.constant 5.000000e-01 : f32
    %211 = vector.broadcast %cst_81 : f32 to vector<8x32xf32>
    %212 = arith.mulf %211, %210 : vector<8x32xf32>
    %cst_82 = arith.constant 5.000000e-01 : f32
    %213 = vector.broadcast %cst_82 : f32 to vector<8x32xf32>
    %214 = arith.addf %212, %213 : vector<8x32xf32>
    %215 = vector.extract_strided_slice %209 {offsets = [0, 32], sizes = [8, 32], strides = [1, 1]} : vector<8x128xf32> to vector<8x32xf32>
    %cst_83 = arith.constant 5.000000e-01 : f32
    %216 = vector.broadcast %cst_83 : f32 to vector<8x32xf32>
    %217 = arith.mulf %216, %215 : vector<8x32xf32>
    %cst_84 = arith.constant 5.000000e-01 : f32
    %218 = vector.broadcast %cst_84 : f32 to vector<8x32xf32>
    %219 = arith.addf %217, %218 : vector<8x32xf32>
    %220 = vector.extract_strided_slice %209 {offsets = [0, 64], sizes = [8, 32], strides = [1, 1]} : vector<8x128xf32> to vector<8x32xf32>
    %221 = vector.extract_strided_slice %209 {offsets = [0, 96], sizes = [8, 32], strides = [1, 1]} : vector<8x128xf32> to vector<8x32xf32>
    %cst_85 = arith.constant 5.000000e-01 : f32
    %222 = vector.broadcast %cst_85 : f32 to vector<8x32xf32>
    %223 = arith.mulf %222, %221 : vector<8x32xf32>
    %cst_86 = arith.constant 5.000000e-01 : f32
    %224 = vector.broadcast %cst_86 : f32 to vector<8x32xf32>
    %225 = arith.addf %223, %224 : vector<8x32xf32>
    %226 = arith.mulf %219, %174 : vector<8x32xf32>
    %227 = arith.mulf %214, %220 : vector<8x32xf32>
    %228 = arith.addf %226, %227 : vector<8x32xf32>
    %229 = math.tanh %228 : vector<8x32xf32>
    %230 = arith.mulf %225, %229 : vector<8x32xf32>
    %c4_i32 = arith.constant 4 : i32
    %231 = arith.index_cast %c4_i32 : i32 to index
    %c0_87 = arith.constant 0 : index
    %c0_88 = arith.constant 0 : index
    %232 = vector.load %arg1[%231, %c0_87, %c0_88] : memref<8x8x128xf32, #tpu.memory_space<vmem>>, vector<1x8x128xf32>
    %233 = vector.shape_cast %232 : vector<1x8x128xf32> to vector<8x128xf32>
    %cst_89 = arith.constant dense<0.000000e+00> : vector<8x128xf32>
    %234 = tpu.matmul %203, %3, %cst_89 {dimension_numbers = #tpu.dot_dimension_numbers<[1], [0], [0], [1], [0, 0, 1, 1], [], []>} : vector<8x32xf32>, vector<32x128xf32>, vector<8x128xf32> -> vector<8x128xf32>
    %235 = arith.addf %233, %234 : vector<8x128xf32>
    %236 = math.tanh %235 : vector<8x128xf32>
    %237 = vector.extract_strided_slice %236 {offsets = [0, 0], sizes = [8, 32], strides = [1, 1]} : vector<8x128xf32> to vector<8x32xf32>
    %cst_90 = arith.constant 5.000000e-01 : f32
    %238 = vector.broadcast %cst_90 : f32 to vector<8x32xf32>
    %239 = arith.mulf %238, %237 : vector<8x32xf32>
    %cst_91 = arith.constant 5.000000e-01 : f32
    %240 = vector.broadcast %cst_91 : f32 to vector<8x32xf32>
    %241 = arith.addf %239, %240 : vector<8x32xf32>
    %242 = vector.extract_strided_slice %236 {offsets = [0, 32], sizes = [8, 32], strides = [1, 1]} : vector<8x128xf32> to vector<8x32xf32>
    %cst_92 = arith.constant 5.000000e-01 : f32
    %243 = vector.broadcast %cst_92 : f32 to vector<8x32xf32>
    %244 = arith.mulf %243, %242 : vector<8x32xf32>
    %cst_93 = arith.constant 5.000000e-01 : f32
    %245 = vector.broadcast %cst_93 : f32 to vector<8x32xf32>
    %246 = arith.addf %244, %245 : vector<8x32xf32>
    %247 = vector.extract_strided_slice %236 {offsets = [0, 64], sizes = [8, 32], strides = [1, 1]} : vector<8x128xf32> to vector<8x32xf32>
    %248 = vector.extract_strided_slice %236 {offsets = [0, 96], sizes = [8, 32], strides = [1, 1]} : vector<8x128xf32> to vector<8x32xf32>
    %cst_94 = arith.constant 5.000000e-01 : f32
    %249 = vector.broadcast %cst_94 : f32 to vector<8x32xf32>
    %250 = arith.mulf %249, %248 : vector<8x32xf32>
    %cst_95 = arith.constant 5.000000e-01 : f32
    %251 = vector.broadcast %cst_95 : f32 to vector<8x32xf32>
    %252 = arith.addf %250, %251 : vector<8x32xf32>
    %253 = arith.mulf %246, %201 : vector<8x32xf32>
    %254 = arith.mulf %241, %247 : vector<8x32xf32>
    %255 = arith.addf %253, %254 : vector<8x32xf32>
    %256 = math.tanh %255 : vector<8x32xf32>
    %257 = arith.mulf %252, %256 : vector<8x32xf32>
    %cst_96 = arith.constant dense<0.000000e+00> : vector<8x128xf32>
    %258 = tpu.matmul %257, %5, %cst_96 {dimension_numbers = #tpu.dot_dimension_numbers<[1], [0], [0], [1], [0, 0, 1, 1], [], []>} : vector<8x32xf32>, vector<32x128xf32>, vector<8x128xf32> -> vector<8x128xf32>
    %cst_97 = arith.constant dense<0.000000e+00> : vector<8x128xf32>
    %259 = tpu.matmul %230, %4, %cst_97 {dimension_numbers = #tpu.dot_dimension_numbers<[1], [0], [0], [1], [0, 0, 1, 1], [], []>} : vector<8x32xf32>, vector<32x128xf32>, vector<8x128xf32> -> vector<8x128xf32>
    %260 = arith.addf %258, %259 : vector<8x128xf32>
    %261 = vector.broadcast %6 : vector<1x128xf32> to vector<8x128xf32>
    %262 = arith.addf %260, %261 : vector<8x128xf32>
    %263 = math.tanh %262 : vector<8x128xf32>
    %264 = vector.extract_strided_slice %263 {offsets = [0, 0], sizes = [8, 32], strides = [1, 1]} : vector<8x128xf32> to vector<8x32xf32>
    %cst_98 = arith.constant 5.000000e-01 : f32
    %265 = vector.broadcast %cst_98 : f32 to vector<8x32xf32>
    %266 = arith.mulf %265, %264 : vector<8x32xf32>
    %cst_99 = arith.constant 5.000000e-01 : f32
    %267 = vector.broadcast %cst_99 : f32 to vector<8x32xf32>
    %268 = arith.addf %266, %267 : vector<8x32xf32>
    %269 = vector.extract_strided_slice %263 {offsets = [0, 32], sizes = [8, 32], strides = [1, 1]} : vector<8x128xf32> to vector<8x32xf32>
    %cst_100 = arith.constant 5.000000e-01 : f32
    %270 = vector.broadcast %cst_100 : f32 to vector<8x32xf32>
    %271 = arith.mulf %270, %269 : vector<8x32xf32>
    %cst_101 = arith.constant 5.000000e-01 : f32
    %272 = vector.broadcast %cst_101 : f32 to vector<8x32xf32>
    %273 = arith.addf %271, %272 : vector<8x32xf32>
    %274 = vector.extract_strided_slice %263 {offsets = [0, 64], sizes = [8, 32], strides = [1, 1]} : vector<8x128xf32> to vector<8x32xf32>
    %275 = vector.extract_strided_slice %263 {offsets = [0, 96], sizes = [8, 32], strides = [1, 1]} : vector<8x128xf32> to vector<8x32xf32>
    %cst_102 = arith.constant 5.000000e-01 : f32
    %276 = vector.broadcast %cst_102 : f32 to vector<8x32xf32>
    %277 = arith.mulf %276, %275 : vector<8x32xf32>
    %cst_103 = arith.constant 5.000000e-01 : f32
    %278 = vector.broadcast %cst_103 : f32 to vector<8x32xf32>
    %279 = arith.addf %277, %278 : vector<8x32xf32>
    %280 = arith.mulf %273, %228 : vector<8x32xf32>
    %281 = arith.mulf %268, %274 : vector<8x32xf32>
    %282 = arith.addf %280, %281 : vector<8x32xf32>
    %283 = math.tanh %282 : vector<8x32xf32>
    %284 = arith.mulf %279, %283 : vector<8x32xf32>
    %c5_i32 = arith.constant 5 : i32
    %285 = arith.index_cast %c5_i32 : i32 to index
    %c0_104 = arith.constant 0 : index
    %c0_105 = arith.constant 0 : index
    %286 = vector.load %arg1[%285, %c0_104, %c0_105] : memref<8x8x128xf32, #tpu.memory_space<vmem>>, vector<1x8x128xf32>
    %287 = vector.shape_cast %286 : vector<1x8x128xf32> to vector<8x128xf32>
    %cst_106 = arith.constant dense<0.000000e+00> : vector<8x128xf32>
    %288 = tpu.matmul %257, %3, %cst_106 {dimension_numbers = #tpu.dot_dimension_numbers<[1], [0], [0], [1], [0, 0, 1, 1], [], []>} : vector<8x32xf32>, vector<32x128xf32>, vector<8x128xf32> -> vector<8x128xf32>
    %289 = arith.addf %287, %288 : vector<8x128xf32>
    %290 = math.tanh %289 : vector<8x128xf32>
    %291 = vector.extract_strided_slice %290 {offsets = [0, 0], sizes = [8, 32], strides = [1, 1]} : vector<8x128xf32> to vector<8x32xf32>
    %cst_107 = arith.constant 5.000000e-01 : f32
    %292 = vector.broadcast %cst_107 : f32 to vector<8x32xf32>
    %293 = arith.mulf %292, %291 : vector<8x32xf32>
    %cst_108 = arith.constant 5.000000e-01 : f32
    %294 = vector.broadcast %cst_108 : f32 to vector<8x32xf32>
    %295 = arith.addf %293, %294 : vector<8x32xf32>
    %296 = vector.extract_strided_slice %290 {offsets = [0, 32], sizes = [8, 32], strides = [1, 1]} : vector<8x128xf32> to vector<8x32xf32>
    %cst_109 = arith.constant 5.000000e-01 : f32
    %297 = vector.broadcast %cst_109 : f32 to vector<8x32xf32>
    %298 = arith.mulf %297, %296 : vector<8x32xf32>
    %cst_110 = arith.constant 5.000000e-01 : f32
    %299 = vector.broadcast %cst_110 : f32 to vector<8x32xf32>
    %300 = arith.addf %298, %299 : vector<8x32xf32>
    %301 = vector.extract_strided_slice %290 {offsets = [0, 64], sizes = [8, 32], strides = [1, 1]} : vector<8x128xf32> to vector<8x32xf32>
    %302 = vector.extract_strided_slice %290 {offsets = [0, 96], sizes = [8, 32], strides = [1, 1]} : vector<8x128xf32> to vector<8x32xf32>
    %cst_111 = arith.constant 5.000000e-01 : f32
    %303 = vector.broadcast %cst_111 : f32 to vector<8x32xf32>
    %304 = arith.mulf %303, %302 : vector<8x32xf32>
    %cst_112 = arith.constant 5.000000e-01 : f32
    %305 = vector.broadcast %cst_112 : f32 to vector<8x32xf32>
    %306 = arith.addf %304, %305 : vector<8x32xf32>
    %307 = arith.mulf %300, %255 : vector<8x32xf32>
    %308 = arith.mulf %295, %301 : vector<8x32xf32>
    %309 = arith.addf %307, %308 : vector<8x32xf32>
    %310 = math.tanh %309 : vector<8x32xf32>
    %311 = arith.mulf %306, %310 : vector<8x32xf32>
    %cst_113 = arith.constant dense<0.000000e+00> : vector<8x128xf32>
    %312 = tpu.matmul %311, %5, %cst_113 {dimension_numbers = #tpu.dot_dimension_numbers<[1], [0], [0], [1], [0, 0, 1, 1], [], []>} : vector<8x32xf32>, vector<32x128xf32>, vector<8x128xf32> -> vector<8x128xf32>
    %cst_114 = arith.constant dense<0.000000e+00> : vector<8x128xf32>
    %313 = tpu.matmul %284, %4, %cst_114 {dimension_numbers = #tpu.dot_dimension_numbers<[1], [0], [0], [1], [0, 0, 1, 1], [], []>} : vector<8x32xf32>, vector<32x128xf32>, vector<8x128xf32> -> vector<8x128xf32>
    %314 = arith.addf %312, %313 : vector<8x128xf32>
    %315 = vector.broadcast %6 : vector<1x128xf32> to vector<8x128xf32>
    %316 = arith.addf %314, %315 : vector<8x128xf32>
    %317 = math.tanh %316 : vector<8x128xf32>
    %318 = vector.extract_strided_slice %317 {offsets = [0, 0], sizes = [8, 32], strides = [1, 1]} : vector<8x128xf32> to vector<8x32xf32>
    %cst_115 = arith.constant 5.000000e-01 : f32
    %319 = vector.broadcast %cst_115 : f32 to vector<8x32xf32>
    %320 = arith.mulf %319, %318 : vector<8x32xf32>
    %cst_116 = arith.constant 5.000000e-01 : f32
    %321 = vector.broadcast %cst_116 : f32 to vector<8x32xf32>
    %322 = arith.addf %320, %321 : vector<8x32xf32>
    %323 = vector.extract_strided_slice %317 {offsets = [0, 32], sizes = [8, 32], strides = [1, 1]} : vector<8x128xf32> to vector<8x32xf32>
    %cst_117 = arith.constant 5.000000e-01 : f32
    %324 = vector.broadcast %cst_117 : f32 to vector<8x32xf32>
    %325 = arith.mulf %324, %323 : vector<8x32xf32>
    %cst_118 = arith.constant 5.000000e-01 : f32
    %326 = vector.broadcast %cst_118 : f32 to vector<8x32xf32>
    %327 = arith.addf %325, %326 : vector<8x32xf32>
    %328 = vector.extract_strided_slice %317 {offsets = [0, 64], sizes = [8, 32], strides = [1, 1]} : vector<8x128xf32> to vector<8x32xf32>
    %329 = vector.extract_strided_slice %317 {offsets = [0, 96], sizes = [8, 32], strides = [1, 1]} : vector<8x128xf32> to vector<8x32xf32>
    %cst_119 = arith.constant 5.000000e-01 : f32
    %330 = vector.broadcast %cst_119 : f32 to vector<8x32xf32>
    %331 = arith.mulf %330, %329 : vector<8x32xf32>
    %cst_120 = arith.constant 5.000000e-01 : f32
    %332 = vector.broadcast %cst_120 : f32 to vector<8x32xf32>
    %333 = arith.addf %331, %332 : vector<8x32xf32>
    %334 = arith.mulf %327, %282 : vector<8x32xf32>
    %335 = arith.mulf %322, %328 : vector<8x32xf32>
    %336 = arith.addf %334, %335 : vector<8x32xf32>
    %337 = math.tanh %336 : vector<8x32xf32>
    %338 = arith.mulf %333, %337 : vector<8x32xf32>
    %c6_i32 = arith.constant 6 : i32
    %339 = arith.index_cast %c6_i32 : i32 to index
    %c0_121 = arith.constant 0 : index
    %c0_122 = arith.constant 0 : index
    %340 = vector.load %arg1[%339, %c0_121, %c0_122] : memref<8x8x128xf32, #tpu.memory_space<vmem>>, vector<1x8x128xf32>
    %341 = vector.shape_cast %340 : vector<1x8x128xf32> to vector<8x128xf32>
    %cst_123 = arith.constant dense<0.000000e+00> : vector<8x128xf32>
    %342 = tpu.matmul %311, %3, %cst_123 {dimension_numbers = #tpu.dot_dimension_numbers<[1], [0], [0], [1], [0, 0, 1, 1], [], []>} : vector<8x32xf32>, vector<32x128xf32>, vector<8x128xf32> -> vector<8x128xf32>
    %343 = arith.addf %341, %342 : vector<8x128xf32>
    %344 = math.tanh %343 : vector<8x128xf32>
    %345 = vector.extract_strided_slice %344 {offsets = [0, 0], sizes = [8, 32], strides = [1, 1]} : vector<8x128xf32> to vector<8x32xf32>
    %cst_124 = arith.constant 5.000000e-01 : f32
    %346 = vector.broadcast %cst_124 : f32 to vector<8x32xf32>
    %347 = arith.mulf %346, %345 : vector<8x32xf32>
    %cst_125 = arith.constant 5.000000e-01 : f32
    %348 = vector.broadcast %cst_125 : f32 to vector<8x32xf32>
    %349 = arith.addf %347, %348 : vector<8x32xf32>
    %350 = vector.extract_strided_slice %344 {offsets = [0, 32], sizes = [8, 32], strides = [1, 1]} : vector<8x128xf32> to vector<8x32xf32>
    %cst_126 = arith.constant 5.000000e-01 : f32
    %351 = vector.broadcast %cst_126 : f32 to vector<8x32xf32>
    %352 = arith.mulf %351, %350 : vector<8x32xf32>
    %cst_127 = arith.constant 5.000000e-01 : f32
    %353 = vector.broadcast %cst_127 : f32 to vector<8x32xf32>
    %354 = arith.addf %352, %353 : vector<8x32xf32>
    %355 = vector.extract_strided_slice %344 {offsets = [0, 64], sizes = [8, 32], strides = [1, 1]} : vector<8x128xf32> to vector<8x32xf32>
    %356 = vector.extract_strided_slice %344 {offsets = [0, 96], sizes = [8, 32], strides = [1, 1]} : vector<8x128xf32> to vector<8x32xf32>
    %cst_128 = arith.constant 5.000000e-01 : f32
    %357 = vector.broadcast %cst_128 : f32 to vector<8x32xf32>
    %358 = arith.mulf %357, %356 : vector<8x32xf32>
    %cst_129 = arith.constant 5.000000e-01 : f32
    %359 = vector.broadcast %cst_129 : f32 to vector<8x32xf32>
    %360 = arith.addf %358, %359 : vector<8x32xf32>
    %361 = arith.mulf %354, %309 : vector<8x32xf32>
    %362 = arith.mulf %349, %355 : vector<8x32xf32>
    %363 = arith.addf %361, %362 : vector<8x32xf32>
    %364 = math.tanh %363 : vector<8x32xf32>
    %365 = arith.mulf %360, %364 : vector<8x32xf32>
    %cst_130 = arith.constant dense<0.000000e+00> : vector<8x128xf32>
    %366 = tpu.matmul %365, %5, %cst_130 {dimension_numbers = #tpu.dot_dimension_numbers<[1], [0], [0], [1], [0, 0, 1, 1], [], []>} : vector<8x32xf32>, vector<32x128xf32>, vector<8x128xf32> -> vector<8x128xf32>
    %cst_131 = arith.constant dense<0.000000e+00> : vector<8x128xf32>
    %367 = tpu.matmul %338, %4, %cst_131 {dimension_numbers = #tpu.dot_dimension_numbers<[1], [0], [0], [1], [0, 0, 1, 1], [], []>} : vector<8x32xf32>, vector<32x128xf32>, vector<8x128xf32> -> vector<8x128xf32>
    %368 = arith.addf %366, %367 : vector<8x128xf32>
    %369 = vector.broadcast %6 : vector<1x128xf32> to vector<8x128xf32>
    %370 = arith.addf %368, %369 : vector<8x128xf32>
    %371 = math.tanh %370 : vector<8x128xf32>
    %372 = vector.extract_strided_slice %371 {offsets = [0, 0], sizes = [8, 32], strides = [1, 1]} : vector<8x128xf32> to vector<8x32xf32>
    %cst_132 = arith.constant 5.000000e-01 : f32
    %373 = vector.broadcast %cst_132 : f32 to vector<8x32xf32>
    %374 = arith.mulf %373, %372 : vector<8x32xf32>
    %cst_133 = arith.constant 5.000000e-01 : f32
    %375 = vector.broadcast %cst_133 : f32 to vector<8x32xf32>
    %376 = arith.addf %374, %375 : vector<8x32xf32>
    %377 = vector.extract_strided_slice %371 {offsets = [0, 32], sizes = [8, 32], strides = [1, 1]} : vector<8x128xf32> to vector<8x32xf32>
    %cst_134 = arith.constant 5.000000e-01 : f32
    %378 = vector.broadcast %cst_134 : f32 to vector<8x32xf32>
    %379 = arith.mulf %378, %377 : vector<8x32xf32>
    %cst_135 = arith.constant 5.000000e-01 : f32
    %380 = vector.broadcast %cst_135 : f32 to vector<8x32xf32>
    %381 = arith.addf %379, %380 : vector<8x32xf32>
    %382 = vector.extract_strided_slice %371 {offsets = [0, 64], sizes = [8, 32], strides = [1, 1]} : vector<8x128xf32> to vector<8x32xf32>
    %383 = vector.extract_strided_slice %371 {offsets = [0, 96], sizes = [8, 32], strides = [1, 1]} : vector<8x128xf32> to vector<8x32xf32>
    %cst_136 = arith.constant 5.000000e-01 : f32
    %384 = vector.broadcast %cst_136 : f32 to vector<8x32xf32>
    %385 = arith.mulf %384, %383 : vector<8x32xf32>
    %cst_137 = arith.constant 5.000000e-01 : f32
    %386 = vector.broadcast %cst_137 : f32 to vector<8x32xf32>
    %387 = arith.addf %385, %386 : vector<8x32xf32>
    %388 = arith.mulf %381, %336 : vector<8x32xf32>
    %389 = arith.mulf %376, %382 : vector<8x32xf32>
    %390 = arith.addf %388, %389 : vector<8x32xf32>
    %391 = math.tanh %390 : vector<8x32xf32>
    %392 = arith.mulf %387, %391 : vector<8x32xf32>
    %c7_i32 = arith.constant 7 : i32
    %393 = arith.index_cast %c7_i32 : i32 to index
    %c0_138 = arith.constant 0 : index
    %c0_139 = arith.constant 0 : index
    %394 = vector.load %arg1[%393, %c0_138, %c0_139] : memref<8x8x128xf32, #tpu.memory_space<vmem>>, vector<1x8x128xf32>
    %395 = vector.shape_cast %394 : vector<1x8x128xf32> to vector<8x128xf32>
    %cst_140 = arith.constant dense<0.000000e+00> : vector<8x128xf32>
    %396 = tpu.matmul %365, %3, %cst_140 {dimension_numbers = #tpu.dot_dimension_numbers<[1], [0], [0], [1], [0, 0, 1, 1], [], []>} : vector<8x32xf32>, vector<32x128xf32>, vector<8x128xf32> -> vector<8x128xf32>
    %397 = arith.addf %395, %396 : vector<8x128xf32>
    %398 = math.tanh %397 : vector<8x128xf32>
    %399 = vector.extract_strided_slice %398 {offsets = [0, 0], sizes = [8, 32], strides = [1, 1]} : vector<8x128xf32> to vector<8x32xf32>
    %cst_141 = arith.constant 5.000000e-01 : f32
    %400 = vector.broadcast %cst_141 : f32 to vector<8x32xf32>
    %401 = arith.mulf %400, %399 : vector<8x32xf32>
    %cst_142 = arith.constant 5.000000e-01 : f32
    %402 = vector.broadcast %cst_142 : f32 to vector<8x32xf32>
    %403 = arith.addf %401, %402 : vector<8x32xf32>
    %404 = vector.extract_strided_slice %398 {offsets = [0, 32], sizes = [8, 32], strides = [1, 1]} : vector<8x128xf32> to vector<8x32xf32>
    %cst_143 = arith.constant 5.000000e-01 : f32
    %405 = vector.broadcast %cst_143 : f32 to vector<8x32xf32>
    %406 = arith.mulf %405, %404 : vector<8x32xf32>
    %cst_144 = arith.constant 5.000000e-01 : f32
    %407 = vector.broadcast %cst_144 : f32 to vector<8x32xf32>
    %408 = arith.addf %406, %407 : vector<8x32xf32>
    %409 = vector.extract_strided_slice %398 {offsets = [0, 64], sizes = [8, 32], strides = [1, 1]} : vector<8x128xf32> to vector<8x32xf32>
    %410 = vector.extract_strided_slice %398 {offsets = [0, 96], sizes = [8, 32], strides = [1, 1]} : vector<8x128xf32> to vector<8x32xf32>
    %cst_145 = arith.constant 5.000000e-01 : f32
    %411 = vector.broadcast %cst_145 : f32 to vector<8x32xf32>
    %412 = arith.mulf %411, %410 : vector<8x32xf32>
    %cst_146 = arith.constant 5.000000e-01 : f32
    %413 = vector.broadcast %cst_146 : f32 to vector<8x32xf32>
    %414 = arith.addf %412, %413 : vector<8x32xf32>
    %415 = arith.mulf %408, %363 : vector<8x32xf32>
    %416 = arith.mulf %403, %409 : vector<8x32xf32>
    %417 = arith.addf %415, %416 : vector<8x32xf32>
    %418 = math.tanh %417 : vector<8x32xf32>
    %419 = arith.mulf %414, %418 : vector<8x32xf32>
    %cst_147 = arith.constant dense<0.000000e+00> : vector<8x128xf32>
    %420 = tpu.matmul %419, %5, %cst_147 {dimension_numbers = #tpu.dot_dimension_numbers<[1], [0], [0], [1], [0, 0, 1, 1], [], []>} : vector<8x32xf32>, vector<32x128xf32>, vector<8x128xf32> -> vector<8x128xf32>
    %cst_148 = arith.constant dense<0.000000e+00> : vector<8x128xf32>
    %421 = tpu.matmul %392, %4, %cst_148 {dimension_numbers = #tpu.dot_dimension_numbers<[1], [0], [0], [1], [0, 0, 1, 1], [], []>} : vector<8x32xf32>, vector<32x128xf32>, vector<8x128xf32> -> vector<8x128xf32>
    %422 = arith.addf %420, %421 : vector<8x128xf32>
    %423 = vector.broadcast %6 : vector<1x128xf32> to vector<8x128xf32>
    %424 = arith.addf %422, %423 : vector<8x128xf32>
    %425 = math.tanh %424 : vector<8x128xf32>
    %426 = vector.extract_strided_slice %425 {offsets = [0, 0], sizes = [8, 32], strides = [1, 1]} : vector<8x128xf32> to vector<8x32xf32>
    %cst_149 = arith.constant 5.000000e-01 : f32
    %427 = vector.broadcast %cst_149 : f32 to vector<8x32xf32>
    %428 = arith.mulf %427, %426 : vector<8x32xf32>
    %cst_150 = arith.constant 5.000000e-01 : f32
    %429 = vector.broadcast %cst_150 : f32 to vector<8x32xf32>
    %430 = arith.addf %428, %429 : vector<8x32xf32>
    %431 = vector.extract_strided_slice %425 {offsets = [0, 32], sizes = [8, 32], strides = [1, 1]} : vector<8x128xf32> to vector<8x32xf32>
    %cst_151 = arith.constant 5.000000e-01 : f32
    %432 = vector.broadcast %cst_151 : f32 to vector<8x32xf32>
    %433 = arith.mulf %432, %431 : vector<8x32xf32>
    %cst_152 = arith.constant 5.000000e-01 : f32
    %434 = vector.broadcast %cst_152 : f32 to vector<8x32xf32>
    %435 = arith.addf %433, %434 : vector<8x32xf32>
    %436 = vector.extract_strided_slice %425 {offsets = [0, 64], sizes = [8, 32], strides = [1, 1]} : vector<8x128xf32> to vector<8x32xf32>
    %437 = vector.extract_strided_slice %425 {offsets = [0, 96], sizes = [8, 32], strides = [1, 1]} : vector<8x128xf32> to vector<8x32xf32>
    %cst_153 = arith.constant 5.000000e-01 : f32
    %438 = vector.broadcast %cst_153 : f32 to vector<8x32xf32>
    %439 = arith.mulf %438, %437 : vector<8x32xf32>
    %cst_154 = arith.constant 5.000000e-01 : f32
    %440 = vector.broadcast %cst_154 : f32 to vector<8x32xf32>
    %441 = arith.addf %439, %440 : vector<8x32xf32>
    %442 = arith.mulf %435, %390 : vector<8x32xf32>
    %443 = arith.mulf %430, %436 : vector<8x32xf32>
    %444 = arith.addf %442, %443 : vector<8x32xf32>
    %445 = math.tanh %444 : vector<8x32xf32>
    %446 = arith.mulf %441, %445 : vector<8x32xf32>
    %c8_i32 = arith.constant 8 : i32
    %c0_155 = arith.constant 0 : index
    %c0_156 = arith.constant 0 : index
    %c0_157 = arith.constant 0 : index
    %447 = vector.load %arg11[%c0_155, %c0_156, %c0_157] : memref<2x8x32xf32, #tpu.memory_space<vmem>>, vector<1x8x32xf32>
    %448 = vector.shape_cast %447 : vector<1x8x32xf32> to vector<8x32xf32>
    %449 = vector.shape_cast %419 : vector<8x32xf32> to vector<1x8x32xf32>
    tpu.vector_store %arg11[%c0_155, %c0_156, %c0_157], %449 {strides = array<i32>} : memref<2x8x32xf32, #tpu.memory_space<vmem>>, vector<1x8x32xf32>,
    %c0_158 = arith.constant 0 : index
    %c0_159 = arith.constant 0 : index
    %c0_160 = arith.constant 0 : index
    %450 = vector.load %arg12[%c0_158, %c0_159, %c0_160] : memref<2x8x32xf32, #tpu.memory_space<vmem>>, vector<1x8x32xf32>
    %451 = vector.shape_cast %450 : vector<1x8x32xf32> to vector<8x32xf32>
    %452 = vector.shape_cast %417 : vector<8x32xf32> to vector<1x8x32xf32>
    tpu.vector_store %arg12[%c0_158, %c0_159, %c0_160], %452 {strides = array<i32>} : memref<2x8x32xf32, #tpu.memory_space<vmem>>, vector<1x8x32xf32>,
    %c1_161 = arith.constant 1 : index
    %c0_162 = arith.constant 0 : index
    %c0_163 = arith.constant 0 : index
    %453 = vector.load %arg11[%c1_161, %c0_162, %c0_163] : memref<2x8x32xf32, #tpu.memory_space<vmem>>, vector<1x8x32xf32>
    %454 = vector.shape_cast %453 : vector<1x8x32xf32> to vector<8x32xf32>
    %455 = vector.shape_cast %446 : vector<8x32xf32> to vector<1x8x32xf32>
    tpu.vector_store %arg11[%c1_161, %c0_162, %c0_163], %455 {strides = array<i32>} : memref<2x8x32xf32, #tpu.memory_space<vmem>>, vector<1x8x32xf32>,
    %c1_164 = arith.constant 1 : index
    %c0_165 = arith.constant 0 : index
    %c0_166 = arith.constant 0 : index
    %456 = vector.load %arg12[%c1_164, %c0_165, %c0_166] : memref<2x8x32xf32, #tpu.memory_space<vmem>>, vector<1x8x32xf32>
    %457 = vector.shape_cast %456 : vector<1x8x32xf32> to vector<8x32xf32>
    %458 = vector.shape_cast %444 : vector<8x32xf32> to vector<1x8x32xf32>
    tpu.vector_store %arg12[%c1_164, %c0_165, %c0_166], %458 {strides = array<i32>} : memref<2x8x32xf32, #tpu.memory_space<vmem>>, vector<1x8x32xf32>,
    %c0_i32_167 = arith.constant 0 : i32
    %459 = arith.cmpi eq, %arg0, %c0_i32_167 : i32
    %460 = arith.extui %459 : i1 to i32
    %c0_i32_168 = arith.constant 0 : i32
    %461 = arith.cmpi ne, %460, %c0_i32_168 : i32
    scf.if %461 {
      %c0_169 = arith.constant 0 : index
      %c0_170 = arith.constant 0 : index
      %462 = vector.load %arg8[%c0_169, %c0_170] : memref<32x5xf32, #tpu.memory_space<vmem>>, vector<32x5xf32>
      %cst_171 = arith.constant dense<0.000000e+00> : vector<8x5xf32>
      %463 = tpu.matmul %446, %462, %cst_171 {dimension_numbers = #tpu.dot_dimension_numbers<[1], [0], [0], [1], [0, 0, 1, 1], [], []>} : vector<8x32xf32>, vector<32x5xf32>, vector<8x5xf32> -> vector<8x5xf32>
      %c0_172 = arith.constant 0 : index
      %c0_173 = arith.constant 0 : index
      %464 = vector.load %arg9[%c0_172, %c0_173] : memref<1x5xf32, #tpu.memory_space<vmem>>, vector<1x5xf32>
      %465 = vector.broadcast %464 : vector<1x5xf32> to vector<8x5xf32>
      %466 = arith.addf %463, %465 : vector<8x5xf32>
      %cst_174 = arith.constant dense<0xFF800000> : vector<5xf32>
      %467 = vector.multi_reduction <maximumf>, %466, %cst_174 [0] : vector<8x5xf32> to vector<5xf32>
      %468 = vector.shape_cast %467 : vector<5xf32> to vector<1x5xf32>
      %469 = vector.broadcast %468 : vector<1x5xf32> to vector<8x5xf32>
      %470 = arith.subf %466, %469 : vector<8x5xf32>
      %471 = math.exp %470 : vector<8x5xf32>
      %cst_175 = arith.constant dense<0.000000e+00> : vector<5xf32>
      %472 = vector.multi_reduction <add>, %471, %cst_175 [0] : vector<8x5xf32> to vector<5xf32>
      %473 = vector.shape_cast %472 : vector<5xf32> to vector<1x5xf32>
      %474 = math.log %473 : vector<1x5xf32>
      %475 = arith.addf %474, %468 : vector<1x5xf32>
      %476 = vector.broadcast %475 : vector<1x5xf32> to vector<8x5xf32>
      %477 = arith.subf %466, %476 : vector<8x5xf32>
      %c0_176 = arith.constant 0 : index
      %c0_177 = arith.constant 0 : index
      %478 = vector.load %arg10[%c0_176, %c0_177] : memref<8x5xf32, #tpu.memory_space<vmem>>, vector<8x5xf32>
      tpu.vector_store %arg10[%c0_176, %c0_177], %477 {strides = array<i32>} : memref<8x5xf32, #tpu.memory_space<vmem>>, vector<8x5xf32>,
    } else {
    }
    return
  }
  func.func @transform_0(%arg0: i32) -> (i32, i32, i32) {
    %c0_i32 = arith.constant 0 : i32
    %c0_i32_0 = arith.constant 0 : i32
    %c0_i32_1 = arith.constant 0 : i32
    return %arg0, %c0_i32, %c0_i32_0 : i32, i32, i32
  }
  func.func @transform_1(%arg0: i32) -> (i32, i32, i32) {
    %c0_i32 = arith.constant 0 : i32
    %c0_i32_0 = arith.constant 0 : i32
    %c0_i32_1 = arith.constant 0 : i32
    %c0_i32_2 = arith.constant 0 : i32
    return %c0_i32, %c0_i32_0, %c0_i32_1 : i32, i32, i32
  }
  func.func @transform_2(%arg0: i32) -> (i32, i32, i32) {
    %c0_i32 = arith.constant 0 : i32
    %c0_i32_0 = arith.constant 0 : i32
    %c0_i32_1 = arith.constant 0 : i32
    %c0_i32_2 = arith.constant 0 : i32
    return %c0_i32, %c0_i32_0, %c0_i32_1 : i32, i32, i32
  }
  func.func @transform_3(%arg0: i32) -> (i32, i32) {
    %c0_i32 = arith.constant 0 : i32
    %c0_i32_0 = arith.constant 0 : i32
    %c0_i32_1 = arith.constant 0 : i32
    return %c0_i32, %c0_i32_0 : i32, i32
  }
  func.func @transform_4(%arg0: i32) -> (i32, i32) {
    %c0_i32 = arith.constant 0 : i32
    %c0_i32_0 = arith.constant 0 : i32
    %c0_i32_1 = arith.constant 0 : i32
    return %c0_i32, %c0_i32_0 : i32, i32
  }
  func.func @transform_5(%arg0: i32) -> (i32, i32) {
    %c0_i32 = arith.constant 0 : i32
    %c0_i32_0 = arith.constant 0 : i32
    %c0_i32_1 = arith.constant 0 : i32
    return %c0_i32, %c0_i32_0 : i32, i32
  }
  func.func @transform_6(%arg0: i32) -> (i32, i32) {
    %c0_i32 = arith.constant 0 : i32
    %c0_i32_0 = arith.constant 0 : i32
    %c0_i32_1 = arith.constant 0 : i32
    return %c0_i32, %c0_i32_0 : i32, i32
  }
  func.func @transform_7(%arg0: i32) -> (i32, i32) {
    %c0_i32 = arith.constant 0 : i32
    %c0_i32_0 = arith.constant 0 : i32
    %c0_i32_1 = arith.constant 0 : i32
    return %c0_i32, %c0_i32_0 : i32, i32
  }
  func.func @transform_8(%arg0: i32) -> (i32, i32) {
    %c0_i32 = arith.constant 0 : i32
    %c0_i32_0 = arith.constant 0 : i32
    %c0_i32_1 = arith.constant 0 : i32
    return %c0_i32, %c0_i32_0 : i32, i32
  }
  func.func @transform_9(%arg0: i32) -> (i32, i32) {
    %c0_i32 = arith.constant 0 : i32
    %c0_i32_0 = arith.constant 0 : i32
    %c0_i32_1 = arith.constant 0 : i32
    return %c0_i32, %c0_i32_0 : i32, i32
  }
  func.func @transform_10(%arg0: i32) -> (i32, i32, i32) {
    %c0_i32 = arith.constant 0 : i32
    %c0_i32_0 = arith.constant 0 : i32
    %c0_i32_1 = arith.constant 0 : i32
    %c0_i32_2 = arith.constant 0 : i32
    return %c0_i32, %c0_i32_0, %c0_i32_1 : i32, i32, i32
  }
  func.func @transform_11(%arg0: i32) -> (i32, i32, i32) {
    %c0_i32 = arith.constant 0 : i32
    %c0_i32_0 = arith.constant 0 : i32
    %c0_i32_1 = arith.constant 0 : i32
    %c0_i32_2 = arith.constant 0 : i32
    return %c0_i32, %c0_i32_0, %c0_i32_1 : i32, i32, i32
  }
}

</mosaic_0001>

<bundles_post_ra>
// kernel: tpu_custom_call.1
= control target key start
LH: loop header
LB: loop body
LE: loop exit
PB: predicated region body
PF: predicated region fallthrough
CT: control target
= control target key end

     0   :  { %17 = vsyncpa [#allocation3], 0  ;;  %s3764_s0 = inlined_call_operand.hbm [shape: f32[8,8,128], index: 0, kind: input, shape index: {}]   ;;  %s3765_s1 = inlined_call_operand.vmem [shape: f32[2,8,32], index: 1, kind: input, shape index: {}]   ;;  %s3766_s2 = inlined_call_operand.hbm [shape: f32[2,8,32], index: 2, kind: input, shape index: {}]   ;;  %s3767_s3 = inlined_call_operand.vmem [shape: f32[32,128], index: 3, kind: input, shape index: {}]   ;;  %s3768_s4 = inlined_call_operand.hbm [shape: f32[32,128], index: 4, kind: input, shape index: {}]   ;;  %s3769_s5 = inlined_call_operand.hbm [shape: f32[32,128], index: 5, kind: input, shape index: {}]   ;;  %s3770_s6 = inlined_call_operand.vmem [shape: f32[1,128], index: 6, kind: input, shape index: {}]   ;;  %s3771_s7 = inlined_call_operand.vmem [shape: f32[32,5], index: 7, kind: input, shape index: {}]   ;;  %s3772_s8 = inlined_call_operand.vmem [shape: f32[1,5], index: 8, kind: input, shape index: {}]   ;;  %s3773_s9 = inlined_call_operand.hbm [shape: f32[8,5], index: 9, kind: output, shape index: {0}]   ;;  %s3774_s10 = inlined_call_operand.hbm [shape: f32[2,8,32], index: 10, kind: output, shape index: {1}]   ;;  %s3775_s11 = inlined_call_operand.hbm [shape: f32[2,8,32], index: 11, kind: output, shape index: {2}]  }
   0x1   :  { %18 = vsyncpa [#allocation6], 0 }
   0x2   :  { %19 = vsyncpa [#allocation9], 0 }
   0x3   :  { %20 = vsyncpa [#allocation4], 0 }
   0x4   :  { %21 = vsyncpa [#allocation12], 0  ;;  %s3249_s17 = smov [#allocation5]   ;;  %s3250_s19 = smov [#allocation2]  }
   0x5   :  { %s41_s18 = sshll.u32 %s3249_s17, 4  ;;  %s27_s20 = sshll.u32 %s3250_s19, 4  ;;  %s42_s18 = int_to_ptr.vmem [resolvable:$true] %s41_s18  ;;  %s3324_s20 = int_to_ptr.vmem [resolvable:$true] %s27_s20 }
   0x6   :  { %s3085_s23 = scalar_lea.hbm %s3766_s2, 256 }
   0x7   :  { %p3086_p0 = scmp.ne.s32.totalorder %s3766_s2, %s3085_s23  ;;  %p3089_p1 = scmp.lt.u32.totalorder %s3085_s23, %s3766_s2 }
   0x9   :  { %p3091_p2 = pnand %p3089_p1, %p3086_p0 }
   0xb   :  { %3094 = shalt.err (!%p3091_p2)
}
   0xc   :  { %s3095_s28 = scalar_lea.vmem %s42_s18, 256  ;;  %p3100_p4 = scmp.lt.s32.totalorder %s42_s18, %s42_s18 }
   0xd   :  { %p3096_p3 = scmp.ne.s32.totalorder %s42_s18, %s3095_s28  ;;  %p3101_p5 = scmp.lt.s32.totalorder %s3095_s28, %s3095_s28 }
   0xf   :  { %p3102_p6 = por %p3101_p5, %p3100_p4 }
  0x11   :  { %p3103_p7 = pnand %p3102_p6, %p3096_p3 }
  0x13   :  { %3106 = shalt.err (!%p3103_p7)
}
  0x14   :  { %s3251_s29 = smov 128   ;;  %s3252_s30 = smov 8  }
  0x15   :  { %47 = dma.hbm_to_vmem [thread:$0]  %s3766_s2, 256, %s42_s18, [#allocation6], %s3251_s29, %s3251_s29, %s3252_s30  }
  0x16   :  { %s3107_s16 = scalar_lea.hbm %s3764_s0, 1024 }
  0x17   :  { %p3108_p8 = scmp.ne.s32.totalorder %s3764_s0, %s3107_s16  ;;  %p3111_p9 = scmp.lt.u32.totalorder %s3107_s16, %s3764_s0 }
  0x19   :  { %p3113_p10 = pnand %p3111_p9, %p3108_p8 }
  0x1b   :  { %3116 = shalt.err (!%p3113_p10)
}
  0x1c   :  { %s3117_s23 = scalar_lea.vmem %s3324_s20, 1024  ;;  %p3122_p12 = scmp.lt.s32.totalorder %s3324_s20, %s3324_s20 }
  0x1d   :  { %p3118_p11 = scmp.ne.s32.totalorder %s3324_s20, %s3117_s23  ;;  %p3123_p13 = scmp.lt.s32.totalorder %s3117_s23, %s3117_s23 }
  0x1f   :  { %p3124_p0 = por %p3123_p13, %p3122_p12 }
  0x21   :  { %p3125_p1 = pnand %p3124_p0, %p3118_p11 }
  0x23   :  { %3128 = shalt.err (!%p3125_p1)
}
  0x24   :  { %33 = dma.hbm_to_vmem [thread:$0]  %s3764_s0, 1024, %s3324_s20, [#allocation3], %s3251_s29, %s3251_s29, %s3252_s30  }
  0x25   :  { %s3253_s24 = smov [#allocation7]   ;;  %s3254_s26 = smov [#allocation8]  }
  0x26   :  { %s55_s25 = sshll.u32 %s3253_s24, 4  ;;  %s67_s27 = sshll.u32 %s3254_s26, 4  ;;  %s56_s25 = int_to_ptr.vmem [resolvable:$true] %s55_s25  ;;  %s3361_s27 = int_to_ptr.vmem [resolvable:$true] %s67_s27 }
  0x27   :  { %s3129_s13 = scalar_lea.hbm %s3768_s4, 512 }
  0x28   :  { %p3130_p2 = scmp.ne.s32.totalorder %s3768_s4, %s3129_s13  ;;  %p3133_p3 = scmp.lt.u32.totalorder %s3129_s13, %s3768_s4 }
  0x2a   :  { %p3135_p4 = pnand %p3133_p3, %p3130_p2 }
  0x2c   :  { %3138 = shalt.err (!%p3135_p4)
}
  0x2d   :  { %s3139_s0 = scalar_lea.vmem %s56_s25, 512  ;;  %p3144_p6 = scmp.lt.s32.totalorder %s56_s25, %s56_s25 }
  0x2e   :  { %p3140_p5 = scmp.ne.s32.totalorder %s56_s25, %s3139_s0  ;;  %p3145_p7 = scmp.lt.s32.totalorder %s3139_s0, %s3139_s0 }
  0x30   :  { %p3146_p8 = por %p3145_p7, %p3144_p6 }
  0x32   :  { %p3147_p9 = pnand %p3146_p8, %p3140_p5 }
  0x34   :  { %3150 = shalt.err (!%p3147_p9)
}
  0x35   :  { %61 = dma.hbm_to_vmem [thread:$0]  %s3768_s4, 512, %s56_s25, [#allocation6], %s3251_s29, %s3251_s29, %s3252_s30  }
  0x36   :  { %s3151_s23 = scalar_lea.hbm %s3769_s5, 512 }
  0x37   :  { %p3152_p10 = scmp.ne.s32.totalorder %s3769_s5, %s3151_s23  ;;  %p3155_p11 = scmp.lt.u32.totalorder %s3151_s23, %s3769_s5 }
  0x39   :  { %p3157_p12 = pnand %p3155_p11, %p3152_p10 }
  0x3b   :  { %3160 = shalt.err (!%p3157_p12)
}
  0x3c   :  { %s3161_s28 = scalar_lea.vmem %s3361_s27, 512  ;;  %p3166_p0 = scmp.lt.s32.totalorder %s3361_s27, %s3361_s27 }
  0x3d   :  { %p3162_p13 = scmp.ne.s32.totalorder %s3361_s27, %s3161_s28  ;;  %p3167_p1 = scmp.lt.s32.totalorder %s3161_s28, %s3161_s28 }
  0x3f   :  { %p3168_p2 = por %p3167_p1, %p3166_p0 }
  0x41   :  { %p3169_p3 = pnand %p3168_p2, %p3162_p13 }
  0x43   :  { %3172 = shalt.err (!%p3169_p3)
}
  0x44   :  { %73 = dma.hbm_to_vmem [thread:$0]  %s3769_s5, 512, %s3361_s27, [#allocation9], %s3251_s29, %s3251_s29, %s3252_s30  }
  0x45   :  { %3239 = dma.done.wait [#allocation3], 1024  }
  0x46   :  { %3240 = vsyncadd [#allocation3], 4294966272 }
  0x47   :  { %3241 = dma.done.wait [#allocation6], 768  }
  0x48   :  { %3242 = vsyncadd [#allocation6], 4294966528 }
  0x49   :  { %3243 = dma.done.wait [#allocation9], 512  }
  0x4a   :  { %3244 = vsyncadd [#allocation9], 4294966784  ;;  %v3255_v0 = vmov 0.0|0.0   ;;  %vm3256_vm0 = vmmov 0   ;;  %v3257_v1 = vmov 0.0   ;;  %vm98_vm1 = vcmask 261120  }
  0x4b   :  { %2852 = vmatprep.subr.bf16.mxu0 %v3255_v0  ;;  %2585 = vmatprep.mubr.msk.f32.mxu0 %vm3256_vm0, %v3257_v1  ;;  %v105_v2 = vld [vmem:[%s3767_s3] sm:$0xff]  ;;  %v106_v3 = vld [vmem:[%s3767_s3 + $0x8] sm:$0xff]  ;;  %v107_v4 = vld [vmem:[%s3767_s3 + $0x10] sm:$0xff]  ;;  %s3259_s19 = smov 32   ;;  %s3260_s5 = smov 96  }
  0x4c   :  { %2858 = vmatprep.subr.bf16.mxu1 %v3255_v0  ;;  %2596 = vmatprep.mubr.msk.f32.mxu1 %vm3256_vm0, %v3257_v1  ;;  %v3413_v5 = vpack.c.bf16 %v106_v3, %v105_v2  ;;  %v108_v6 = vld [vmem:[%s3767_s3 + $0x18] sm:$0xff]  ;;  %v96_v7 = vld [vmem:[%s3765_s1] sm:$0xff]  ;;  %s3258_s3 = smov 64   ;;  %v109_v25 = vld [vmem:[#allocation7] sm:$0xff] }
  0x4d   :  { %99 = vst.msk [vmem:[#allocation11] sm:$0xff] %vm98_vm1, %v96_v7  ;;  %v3423_v8 = vpack.c.bf16 %v108_v6, %v107_v4  ;;  %v101_v10 = vld [vmem:[#allocation5] sm:$0xff]  ;;  %v110_v26 = vld [vmem:[#allocation7 + $0x8] sm:$0xff]  ;;  %v112_v29 = vld [vmem:[#allocation7 + $0x18] sm:$0xff] }
  0x4e   :  { %2854 = vmatpush3.bf16.msra.mxu0 %v3413_v5  ;;  %103 = vst.msk [vmem:[#allocation13] sm:$0xff] %vm98_vm1, %v101_v10  ;;  %v124_v11 = vld [vmem:[#allocation2] sm:$0xff]  ;;  %v3438_v28 = vpack.c.bf16 %v110_v26, %v109_v25  ;;  %v97_v30 = vld [vmem:[%s3765_s1 + $0x8] sm:$0xff]  ;;  %v113_v31 = vld [vmem:[#allocation8] sm:$0xff] }
  0x4f   :  { %2855 = vmatprep.subr.bf16.mxu0 %v3255_v0  ;;  %v111_v27 = vld [vmem:[#allocation7 + $0x10] sm:$0xff]  ;;  %100 = vst.msk [vmem:[#allocation11 + $0x8] sm:$0xff] %vm98_vm1, %v97_v30  ;;  %v114_v32 = vld [vmem:[#allocation8 + $0x8] sm:$0xff]  ;;  %v116_v34 = vld [vmem:[#allocation8 + $0x18] sm:$0xff] }
  0x50   :  { %v115_v33 = vld [vmem:[#allocation8 + $0x10] sm:$0xff]  ;;  %2860 = vmatpush3.bf16.msra.mxu1 %v3438_v28  ;;  %v3445_v35 = vpack.c.bf16 %v112_v29, %v111_v27  ;;  %v3447_v36 = vpack.c.bf16 %v114_v32, %v113_v31  ;;  %v102_v45 = vld [vmem:[#allocation5 + $0x8] sm:$0xff]  ;;  %v668_v27 = vld [vmem:[#allocation2 + $0x10] sm:$0xff] }
  0x51   :  { %2861 = vmatprep.subr.bf16.mxu1 %v3255_v0  ;;  %v3451_v37 = vpack.c.bf16 %v116_v34, %v115_v33  ;;  %104 = vst.msk [vmem:[#allocation13 + $0x8] sm:$0xff] %vm98_vm1, %v102_v45  ;;  %v404_v46 = vld [vmem:[#allocation2 + $0x8] sm:$0xff]  ;;  %v3485_v47 = vld [vmem:[%s3770_s6] ss:$0 sm:$0xff] }
  0x52   :  { %2857 = vmatpush3.bf16.msra.mxu0 %v3423_v8 }
  0x53   :  { %2864 = vmatprep.subr.bf16.mxu0 %v3255_v0 }
  0x54   :  { %v118_v9 = vld [vmem:[#allocation11] sm:$0xff]  ;;  %2863 = vmatpush3.bf16.msra.mxu1 %v3445_v35 }
  0x55   :  { %2586 = vmatmul.mubr.msk.f32.vlgmr.msra.gmra.mrb[0].mxu0 %vm98_vm1, %v118_v9  ;;  %v121_v16 = vld [vmem:[#allocation13] sm:$0xff]  ;;  %2870 = vmatprep.subr.bf16.mxu1 %v3255_v0 }
  0x56   :  { %2607 = vmatprep.mubr.msk.f32.mxu0 %vm3256_vm0, %v3257_v1  ;;  %2866 = vmatpush3.bf16.msra.mxu0 %v3447_v36  ;;  %v120_v38 = vld [vmem:[#allocation11 + $0x8] sm:$0xff] }
  0x57   :  { %2867 = vmatprep.subr.bf16.mxu0 %v3255_v0  ;;  %2597 = vmatmul.mubr.msk.f32.vlgmr.msra.gmra.mrb[0].mxu1 %vm98_vm1, %v120_v38 }
  0x58   :  { %2872 = vmatpush3.bf16.msra.mxu1 %v3413_v5  ;;  %2618 = vmatprep.mubr.msk.f32.mxu1 %vm3256_vm0, %v3257_v1  ;;  %v123_v57 = vld [vmem:[#allocation13 + $0x8] sm:$0xff] }
  0x59   :  { %2873 = vmatprep.subr.bf16.mxu1 %v3255_v0 }
  0x5a   :  { %2869 = vmatpush3.bf16.msra.mxu0 %v3451_v37 }
  0x5b   :  { %2876 = vmatprep.subr.bf16.mxu0 %v3255_v0 }
  0x5c   :  { %2875 = vmatpush3.bf16.msra.mxu1 %v3423_v8 }
  0x5d   :  { %2882 = vmatprep.subr.bf16.mxu1 %v3255_v0 }
 0x128   :  { %v195_v12 = vpop.f32.mrb[0].mxu0 }
 0x129   :  { %v199_v13 = vadd.f32 %v195_v12, %v124_v11  ;;  %v2587_v14 = vpop.f32.mrb[1].mxu0 }
 0x12a   :  { %v293_v42 = vpop.f32.mrb[0].mxu1 }
 0x12b   :  { %3017 = vtanh.f32 %v199_v13  ;;  %v2598_v43 = vpop.f32.mrb[1].mxu1 }
 0x135   :  { %v3018_v15 = vpop.eup %3017 }
 0x136   :  { %209 = vrot.lane.b32.xlu0 %v3018_v15, %s3258_s3  ;;  %v201_v17 = vmul.f32 0.5, %v3018_v15 }
 0x138   :  { %v202_v18 = vadd.f32 0.5, %v201_v17 }
 0x13a   :  { %204 = vrot.lane.b32.xlu0 %v121_v16, %s3259_s19 }
 0x1a8   :  { %v210_v19 = vpop.permute.xlu0 %209 }
 0x1a9   :  { %v212_v20 = vmul.f32 %v210_v19, %v202_v18 }
 0x1ab   :  { %214 = vrot.lane.b32.xlu1 %v212_v20, %s3259_s19 }
 0x1ac   :  { %v205_v21 = vpop.permute.xlu0 %204 }
 0x1ad   :  { %v207_v22 = vmul.f32 %v205_v21, %v202_v18 }
 0x21d   :  { %v215_v23 = vpop.permute.xlu1 %214 }
 0x21e   :  { %v3435_v24 = vadd.f32 %v215_v23, %v207_v22 }
 0x220   :  { %3019 = vtanh.f32 %v3435_v24 }
 0x22a   :  { %v3020_v39 = vpop.eup %3019 }
 0x22b   :  { %220 = vrot.lane.b32.xlu1 %v3020_v39, %s3258_s3 }
 0x29d   :  { %v221_v40 = vpop.permute.xlu1 %220 }
 0x29e   :  { %v223_v41 = vmul.f32 %v221_v40, %v202_v18 }
 0x2a0   :  { %298 = vrot.lane.b32.xlu0 %v223_v41, %s3259_s19 }
 0x312   :  { %v299_v44 = vpop.permute.xlu0 %298 }
 0x313   :  { %2608 = vmatmul.mubr.msk.f32.vlgmr.msra.gmra.mrb[2].mxu0 %vm98_vm1, %v299_v44  ;;  %2619 = vmatmul.mubr.msk.f32.vlgmr.msra.gmra.mrb[2].mxu1 %vm98_vm1, %v299_v44 }
 0x314   :  { %2884 = vmatpush3.bf16.msra.mxu1 %v3447_v36  ;;  %2878 = vmatpush3.bf16.msra.mxu0 %v3438_v28 }
 0x315   :  { %2885 = vmatprep.subr.bf16.mxu1 %v3255_v0  ;;  %2879 = vmatprep.subr.bf16.mxu0 %v3255_v0 }
 0x316   :  { %2640 = vmatprep.mubr.msk.f32.mxu1 %vm3256_vm0, %v3257_v1  ;;  %2629 = vmatprep.mubr.msk.f32.mxu0 %vm3256_vm0, %v3257_v1 }
 0x318   :  { %2887 = vmatpush3.bf16.msra.mxu1 %v3451_v37  ;;  %2881 = vmatpush3.bf16.msra.mxu0 %v3445_v35 }
 0x319   :  { %2888 = vmatprep.subr.bf16.mxu0 %v3255_v0  ;;  %2894 = vmatprep.subr.bf16.mxu1 %v3255_v0 }
 0x3e6   :  { %v368_v48 = vpop.f32.mrb[2].mxu0  ;;  %v471_v49 = vpop.f32.mrb[2].mxu1 }
 0x3e7   :  { %v369_v50 = vadd.f32 %v368_v48, %v293_v42  ;;  %v475_v51 = vadd.f32 %v471_v49, %v404_v46  ;;  %v2609_v52 = vpop.f32.mrb[3].mxu0  ;;  %v2620_v53 = vpop.f32.mrb[3].mxu1 }
 0x3e9   :  { %v378_v54 = vadd.f32 %v3485_v47, %v369_v50  ;;  %3021 = vtanh.f32 %v475_v51 }
 0x3eb   :  { %3023 = vtanh.f32 %v378_v54 }
 0x3f3   :  { %v3022_v55 = vpop.eup %3021 }
 0x3f4   :  { %481 = vrot.lane.b32.xlu0 %v3022_v55, %s3258_s3  ;;  %v477_v58 = vmul.f32 0.5, %v3022_v55 }
 0x3f5   :  { %v3024_v56 = vpop.eup %3023 }
 0x3f6   :  { %388 = vrot.lane.b32.xlu1 %v3024_v56, %s3258_s3  ;;  %v380_v59 = vmul.f32 0.5, %v3024_v56  ;;  %v478_v60 = vadd.f32 0.5, %v477_v58 }
 0x3f8   :  { %v381_v63 = vadd.f32 0.5, %v380_v59  ;;  %v479_v6 = vmul.f32 %v478_v60, %v3435_v24 }
 0x3fa   :  { %383 = vrot.lane.b32.xlu1 %v123_v57, %s3259_s19 }
 0x466   :  { %v482_v61 = vpop.permute.xlu0 %481 }
 0x467   :  { %v484_v62 = vmul.f32 %v482_v61, %v478_v60 }
 0x468   :  { %v389_v2 = vpop.permute.xlu1 %388 }
 0x469   :  { %v391_v3 = vmul.f32 %v389_v2, %v381_v63  ;;  %486 = vrot.lane.b32.xlu1 %v484_v62, %s3259_s19 }
 0x46b   :  { %393 = vrot.lane.b32.xlu0 %v391_v3, %s3259_s19 }
 0x46c   :  { %v384_v4 = vpop.permute.xlu1 %383 }
 0x46d   :  { %v386_v9 = vmul.f32 %v384_v4, %v381_v63 }
 0x4db   :  { %v487_v7 = vpop.permute.xlu1 %486 }
 0x4dc   :  { %v3494_v10 = vadd.f32 %v487_v7, %v479_v6 }
 0x4dd   :  { %v394_v11 = vpop.permute.xlu0 %393 }
 0x4de   :  { %3025 = vtanh.f32 %v3494_v10  ;;  %v396_v12 = vadd.f32 %v394_v11, %v386_v9 }
 0x4e0   :  { %3027 = vtanh.f32 %v396_v12 }
 0x4e8   :  { %v3026_v13 = vpop.eup %3025 }
 0x4e9   :  { %492 = vrot.lane.b32.xlu1 %v3026_v13, %s3258_s3 }
 0x4ea   :  { %v3028_v14 = vpop.eup %3027 }
 0x4eb   :  { %399 = vrot.lane.b32.xlu0 %v3028_v14, %s3258_s3 }
 0x55b   :  { %v493_v15 = vpop.permute.xlu1 %492 }
 0x55c   :  { %v495_v16 = vmul.f32 %v493_v15, %v478_v60 }
 0x55d   :  { %v400_v17 = vpop.permute.xlu0 %399 }
 0x55e   :  { %v402_v18 = vmul.f32 %v400_v17, %v381_v63  ;;  %572 = vrot.lane.b32.xlu1 %v495_v16, %s3259_s19  ;;  %v932_v63 = vld [vmem:[#allocation2 + $0x18] sm:$0xff] }
 0x560   :  { %497 = vrot.lane.b32.xlu0 %v402_v18, %s3259_s19 }
 0x5d0   :  { %v573_v19 = vpop.permute.xlu1 %572 }
 0x5d1   :  { %2641 = vmatmul.mubr.msk.f32.vlgmr.msra.gmra.mrb[4].mxu1 %vm98_vm1, %v573_v19 }
 0x5d2   :  { %v498_v20 = vpop.permute.xlu0 %497  ;;  %2896 = vmatpush3.bf16.msra.mxu1 %v3438_v28  ;;  %2662 = vmatprep.mubr.msk.f32.mxu1 %vm3256_vm0, %v3257_v1 }
 0x5d3   :  { %2630 = vmatmul.mubr.msk.f32.vlgmr.msra.gmra.mrb[4].mxu0 %vm98_vm1, %v498_v20  ;;  %2897 = vmatprep.subr.bf16.mxu1 %v3255_v0 }
 0x5d4   :  { %2890 = vmatpush3.bf16.msra.mxu0 %v3413_v5  ;;  %2651 = vmatprep.mubr.msk.f32.mxu0 %vm3256_vm0, %v3257_v1 }
 0x5d5   :  { %2891 = vmatprep.subr.bf16.mxu0 %v3255_v0 }
 0x5d6   :  { %2899 = vmatpush3.bf16.msra.mxu1 %v3445_v35 }
 0x5d7   :  { %2906 = vmatprep.subr.bf16.mxu1 %v3255_v0 }
 0x5d8   :  { %2893 = vmatpush3.bf16.msra.mxu0 %v3423_v8 }
 0x5d9   :  { %2900 = vmatprep.subr.bf16.mxu0 %v3255_v0 }
 0x5db   :  { %2652 = vmatmul.mubr.msk.f32.vlgmr.msra.gmra.mrb[6].mxu0 %vm98_vm1, %v573_v19 }
 0x5dc   :  { %2902 = vmatpush3.bf16.msra.mxu0 %v3447_v36  ;;  %2673 = vmatprep.mubr.msk.f32.mxu0 %vm3256_vm0, %v3257_v1 }
 0x5dd   :  { %2903 = vmatprep.subr.bf16.mxu0 %v3255_v0 }
 0x5e0   :  { %2905 = vmatpush3.bf16.msra.mxu0 %v3451_v37 }
 0x5e1   :  { %2912 = vmatprep.subr.bf16.mxu0 %v3255_v0 }
 0x6a4   :  { %v642_v21 = vpop.f32.mrb[4].mxu1 }
 0x6a5   :  { %v2642_v22 = vpop.f32.mrb[5].mxu1 }
 0x6a6   :  { %v567_v23 = vpop.f32.mrb[4].mxu0 }
 0x6a7   :  { %v643_v24 = vadd.f32 %v642_v21, %v567_v23  ;;  %v2631_v25 = vpop.f32.mrb[5].mxu0 }
 0x6a9   :  { %v646_v26 = vadd.f32 %v3485_v47, %v643_v24 }
 0x6ab   :  { %3029 = vtanh.f32 %v646_v26 }
 0x6ae   :  { %v735_v29 = vpop.f32.mrb[6].mxu0 }
 0x6af   :  { %v739_v30 = vadd.f32 %v735_v29, %v668_v27  ;;  %v2653_v31 = vpop.f32.mrb[7].mxu0 }
 0x6b1   :  { %3031 = vtanh.f32 %v739_v30 }
 0x6b5   :  { %v3030_v32 = vpop.eup %3029 }
 0x6b6   :  { %652 = vrot.lane.b32.xlu0 %v3030_v32, %s3258_s3  ;;  %v648_v34 = vmul.f32 0.5, %v3030_v32 }
 0x6b8   :  { %v649_v38 = vadd.f32 0.5, %v648_v34 }
 0x6ba   :  { %v650_v45 = vmul.f32 %v649_v38, %v396_v12 }
 0x6bb   :  { %v3032_v33 = vpop.eup %3031 }
 0x6bc   :  { %745 = vrot.lane.b32.xlu1 %v3032_v33, %s3258_s3  ;;  %v741_v41 = vmul.f32 0.5, %v3032_v33 }
 0x6be   :  { %v742_v42 = vadd.f32 0.5, %v741_v41 }
 0x6c0   :  { %v743_v49 = vmul.f32 %v742_v42, %v3494_v10 }
 0x728   :  { %v653_v39 = vpop.permute.xlu0 %652 }
 0x729   :  { %v655_v40 = vmul.f32 %v653_v39, %v649_v38 }
 0x72b   :  { %657 = vrot.lane.b32.xlu0 %v655_v40, %s3259_s19 }
 0x72e   :  { %v746_v43 = vpop.permute.xlu1 %745 }
 0x72f   :  { %v748_v44 = vmul.f32 %v746_v43, %v742_v42 }
 0x731   :  { %750 = vrot.lane.b32.xlu1 %v748_v44, %s3259_s19  ;;  %v1196_v44 = vld [vmem:[#allocation2 + $0x20] sm:$0xff] }
 0x79d   :  { %v658_v46 = vpop.permute.xlu0 %657 }
 0x79e   :  { %v660_v48 = vadd.f32 %v658_v46, %v650_v45 }
 0x7a0   :  { %3033 = vtanh.f32 %v660_v48 }
 0x7a3   :  { %v751_v50 = vpop.permute.xlu1 %750 }
 0x7a4   :  { %v753_v51 = vadd.f32 %v751_v50, %v743_v49 }
 0x7a6   :  { %3035 = vtanh.f32 %v753_v51 }
 0x7aa   :  { %v3034_v52 = vpop.eup %3033 }
 0x7ab   :  { %663 = vrot.lane.b32.xlu0 %v3034_v52, %s3258_s3 }
 0x7b0   :  { %v3036_v53 = vpop.eup %3035 }
 0x7b1   :  { %756 = vrot.lane.b32.xlu1 %v3036_v53, %s3258_s3 }
 0x81d   :  { %v664_v54 = vpop.permute.xlu0 %663 }
 0x81e   :  { %v666_v55 = vmul.f32 %v664_v54, %v649_v38 }
 0x820   :  { %761 = vrot.lane.b32.xlu0 %v666_v55, %s3259_s19 }
 0x823   :  { %v757_v56 = vpop.permute.xlu1 %756 }
 0x824   :  { %v759_v57 = vmul.f32 %v757_v56, %v742_v42 }
 0x826   :  { %836 = vrot.lane.b32.xlu1 %v759_v57, %s3259_s19 }
 0x892   :  { %v762_v58 = vpop.permute.xlu0 %761 }
 0x893   :  { %2663 = vmatmul.mubr.msk.f32.vlgmr.msra.gmra.mrb[6].mxu1 %vm98_vm1, %v762_v58 }
 0x894   :  { %2908 = vmatpush3.bf16.msra.mxu1 %v3413_v5  ;;  %2684 = vmatprep.mubr.msk.f32.mxu1 %vm3256_vm0, %v3257_v1 }
 0x895   :  { %2909 = vmatprep.subr.bf16.mxu1 %v3255_v0 }
 0x898   :  { %2911 = vmatpush3.bf16.msra.mxu1 %v3423_v8  ;;  %v837_v59 = vpop.permute.xlu1 %836 }
 0x899   :  { %2674 = vmatmul.mubr.msk.f32.vlgmr.msra.gmra.mrb[8].mxu0 %vm98_vm1, %v837_v59  ;;  %2918 = vmatprep.subr.bf16.mxu1 %v3255_v0 }
 0x89a   :  { %2914 = vmatpush3.bf16.msra.mxu0 %v3438_v28  ;;  %2695 = vmatprep.mubr.msk.f32.mxu0 %vm3256_vm0, %v3257_v1 }
 0x89b   :  { %2685 = vmatmul.mubr.msk.f32.vlgmr.msra.gmra.mrb[8].mxu1 %vm98_vm1, %v837_v59  ;;  %2915 = vmatprep.subr.bf16.mxu0 %v3255_v0 }
 0x89c   :  { %2920 = vmatpush3.bf16.msra.mxu1 %v3447_v36  ;;  %2706 = vmatprep.mubr.msk.f32.mxu1 %vm3256_vm0, %v3257_v1 }
 0x89d   :  { %2921 = vmatprep.subr.bf16.mxu1 %v3255_v0 }
 0x89e   :  { %2917 = vmatpush3.bf16.msra.mxu0 %v3445_v35 }
 0x89f   :  { %2924 = vmatprep.subr.bf16.mxu0 %v3255_v0 }
 0x8a0   :  { %2923 = vmatpush3.bf16.msra.mxu1 %v3451_v37 }
 0x8a1   :  { %2930 = vmatprep.subr.bf16.mxu1 %v3255_v0 }
 0x966   :  { %v831_v60 = vpop.f32.mrb[6].mxu1 }
 0x967   :  { %v2664_v61 = vpop.f32.mrb[7].mxu1 }
 0x96c   :  { %v906_v62 = vpop.f32.mrb[8].mxu0 }
 0x96d   :  { %v907_v2 = vadd.f32 %v906_v62, %v831_v60  ;;  %v2675_v3 = vpop.f32.mrb[9].mxu0 }
 0x96e   :  { %v999_v4 = vpop.f32.mrb[8].mxu1 }
 0x96f   :  { %v910_v6 = vadd.f32 %v3485_v47, %v907_v2  ;;  %v1003_v7 = vadd.f32 %v999_v4, %v932_v63  ;;  %v2686_v9 = vpop.f32.mrb[9].mxu1 }
 0x971   :  { %3037 = vtanh.f32 %v910_v6 }
 0x972   :  { %3039 = vtanh.f32 %v1003_v7 }
 0x97b   :  { %v3038_v10 = vpop.eup %3037 }
 0x97c   :  { %v3040_v11 = vpop.eup %3039  ;;  %916 = vrot.lane.b32.xlu0 %v3038_v10, %s3258_s3  ;;  %v912_v12 = vmul.f32 0.5, %v3038_v10 }
 0x97d   :  { %1009 = vrot.lane.b32.xlu1 %v3040_v11, %s3258_s3  ;;  %v1005_v13 = vmul.f32 0.5, %v3040_v11 }
 0x97e   :  { %v913_v14 = vadd.f32 0.5, %v912_v12 }
 0x97f   :  { %v1006_v15 = vadd.f32 0.5, %v1005_v13 }
 0x980   :  { %v914_v20 = vmul.f32 %v913_v14, %v660_v48 }
 0x981   :  { %v1007_v21 = vmul.f32 %v1006_v15, %v753_v51 }
 0x9ee   :  { %v917_v16 = vpop.permute.xlu0 %916 }
 0x9ef   :  { %v1010_v17 = vpop.permute.xlu1 %1009  ;;  %v919_v18 = vmul.f32 %v917_v16, %v913_v14 }
 0x9f0   :  { %v1012_v19 = vmul.f32 %v1010_v17, %v1006_v15 }
 0x9f1   :  { %921 = vrot.lane.b32.xlu0 %v919_v18, %s3259_s19  ;;  %v1460_v18 = vld [vmem:[#allocation2 + $0x28] sm:$0xff] }
 0x9f2   :  { %1014 = vrot.lane.b32.xlu1 %v1012_v19, %s3259_s19 }
 0xa63   :  { %v922_v22 = vpop.permute.xlu0 %921 }
 0xa64   :  { %v1015_v23 = vpop.permute.xlu1 %1014  ;;  %v924_v24 = vadd.f32 %v922_v22, %v914_v20 }
 0xa65   :  { %v3558_v25 = vadd.f32 %v1015_v23, %v1007_v21 }
 0xa66   :  { %3041 = vtanh.f32 %v924_v24 }
 0xa67   :  { %3043 = vtanh.f32 %v3558_v25 }
 0xa70   :  { %v3042_v26 = vpop.eup %3041 }
 0xa71   :  { %v3044_v27 = vpop.eup %3043  ;;  %927 = vrot.lane.b32.xlu0 %v3042_v26, %s3258_s3 }
 0xa72   :  { %1020 = vrot.lane.b32.xlu1 %v3044_v27, %s3258_s3 }
 0xae3   :  { %v928_v29 = vpop.permute.xlu0 %927 }
 0xae4   :  { %v1021_v30 = vpop.permute.xlu1 %1020  ;;  %v930_v31 = vmul.f32 %v928_v29, %v913_v14 }
 0xae5   :  { %v1023_v32 = vmul.f32 %v1021_v30, %v1006_v15 }
 0xae6   :  { %1025 = vrot.lane.b32.xlu0 %v930_v31, %s3259_s19 }
 0xae7   :  { %1100 = vrot.lane.b32.xlu1 %v1023_v32, %s3259_s19 }
 0xb58   :  { %v1026_v33 = vpop.permute.xlu0 %1025 }
 0xb59   :  { %v1101_v34 = vpop.permute.xlu1 %1100  ;;  %2696 = vmatmul.mubr.msk.f32.vlgmr.msra.gmra.mrb[10].mxu0 %vm98_vm1, %v1026_v33 }
 0xb5a   :  { %2707 = vmatmul.mubr.msk.f32.vlgmr.msra.gmra.mrb[10].mxu1 %vm98_vm1, %v1101_v34  ;;  %2926 = vmatpush3.bf16.msra.mxu0 %v3413_v5 }
 0xb5b   :  { %2927 = vmatprep.subr.bf16.mxu0 %v3255_v0  ;;  %2717 = vmatprep.mubr.msk.f32.mxu0 %vm3256_vm0, %v3257_v1 }
 0xb5c   :  { %2932 = vmatpush3.bf16.msra.mxu1 %v3438_v28  ;;  %2728 = vmatprep.mubr.msk.f32.mxu1 %vm3256_vm0, %v3257_v1 }
 0xb5d   :  { %2933 = vmatprep.subr.bf16.mxu1 %v3255_v0 }
 0xb5e   :  { %2929 = vmatpush3.bf16.msra.mxu0 %v3423_v8 }
 0xb5f   :  { %2936 = vmatprep.subr.bf16.mxu0 %v3255_v0 }
 0xb60   :  { %2935 = vmatpush3.bf16.msra.mxu1 %v3445_v35 }
 0xb61   :  { %2718 = vmatmul.mubr.msk.f32.vlgmr.msra.gmra.mrb[12].mxu0 %vm98_vm1, %v1101_v34  ;;  %2942 = vmatprep.subr.bf16.mxu1 %v3255_v0 }
 0xb62   :  { %2938 = vmatpush3.bf16.msra.mxu0 %v3447_v36  ;;  %2739 = vmatprep.mubr.msk.f32.mxu0 %vm3256_vm0, %v3257_v1 }
 0xb63   :  { %2939 = vmatprep.subr.bf16.mxu0 %v3255_v0 }
 0xb66   :  { %2941 = vmatpush3.bf16.msra.mxu0 %v3451_v37 }
 0xb67   :  { %2948 = vmatprep.subr.bf16.mxu0 %v3255_v0 }
 0xc2c   :  { %v1095_v38 = vpop.f32.mrb[10].mxu0 }
 0xc2d   :  { %v1170_v39 = vpop.f32.mrb[10].mxu1  ;;  %v2697_v40 = vpop.f32.mrb[11].mxu0 }
 0xc2e   :  { %v1171_v41 = vadd.f32 %v1170_v39, %v1095_v38  ;;  %v2708_v42 = vpop.f32.mrb[11].mxu1 }
 0xc30   :  { %v1174_v43 = vadd.f32 %v3485_v47, %v1171_v41 }
 0xc32   :  { %3045 = vtanh.f32 %v1174_v43 }
 0xc34   :  { %v1263_v45 = vpop.f32.mrb[12].mxu0 }
 0xc35   :  { %v1267_v46 = vadd.f32 %v1263_v45, %v1196_v44  ;;  %v2719_v48 = vpop.f32.mrb[13].mxu0 }
 0xc37   :  { %3047 = vtanh.f32 %v1267_v46 }
 0xc3c   :  { %v3046_v49 = vpop.eup %3045 }
 0xc3d   :  { %1180 = vrot.lane.b32.xlu0 %v3046_v49, %s3258_s3  ;;  %v1176_v51 = vmul.f32 0.5, %v3046_v49 }
 0xc3f   :  { %v1177_v52 = vadd.f32 0.5, %v1176_v51 }
 0xc41   :  { %v3048_v50 = vpop.eup %3047  ;;  %v1178_v59 = vmul.f32 %v1177_v52, %v924_v24 }
 0xc42   :  { %1273 = vrot.lane.b32.xlu1 %v3048_v50, %s3258_s3  ;;  %v1269_v54 = vmul.f32 0.5, %v3048_v50 }
 0xc44   :  { %v1270_v56 = vadd.f32 0.5, %v1269_v54 }
 0xc46   :  { %v1271_v62 = vmul.f32 %v1270_v56, %v3558_v25 }
 0xcaf   :  { %v1181_v53 = vpop.permute.xlu0 %1180 }
 0xcb0   :  { %v1183_v55 = vmul.f32 %v1181_v53, %v1177_v52 }
 0xcb2   :  { %1185 = vrot.lane.b32.xlu0 %v1183_v55, %s3259_s19 }
 0xcb4   :  { %v1274_v57 = vpop.permute.xlu1 %1273 }
 0xcb5   :  { %v1276_v58 = vmul.f32 %v1274_v57, %v1270_v56 }
 0xcb7   :  { %1278 = vrot.lane.b32.xlu1 %v1276_v58, %s3259_s19  ;;  %v1724_v58 = vld [vmem:[#allocation2 + $0x30] sm:$0xff] }
 0xd24   :  { %v1186_v60 = vpop.permute.xlu0 %1185 }
 0xd25   :  { %v1188_v61 = vadd.f32 %v1186_v60, %v1178_v59 }
 0xd27   :  { %3049 = vtanh.f32 %v1188_v61 }
 0xd29   :  { %v1279_v63 = vpop.permute.xlu1 %1278 }
 0xd2a   :  { %v1281_v2 = vadd.f32 %v1279_v63, %v1271_v62 }
 0xd2c   :  { %3051 = vtanh.f32 %v1281_v2 }
 0xd31   :  { %v3050_v3 = vpop.eup %3049 }
 0xd32   :  { %1191 = vrot.lane.b32.xlu0 %v3050_v3, %s3258_s3 }
 0xd36   :  { %v3052_v4 = vpop.eup %3051 }
 0xd37   :  { %1284 = vrot.lane.b32.xlu1 %v3052_v4, %s3258_s3 }
 0xda4   :  { %v1192_v6 = vpop.permute.xlu0 %1191 }
 0xda5   :  { %v1194_v7 = vmul.f32 %v1192_v6, %v1177_v52 }
 0xda7   :  { %1289 = vrot.lane.b32.xlu0 %v1194_v7, %s3259_s19 }
 0xda9   :  { %v1285_v9 = vpop.permute.xlu1 %1284 }
 0xdaa   :  { %v1287_v10 = vmul.f32 %v1285_v9, %v1270_v56 }
 0xdac   :  { %1364 = vrot.lane.b32.xlu1 %v1287_v10, %s3259_s19 }
 0xe19   :  { %v1290_v11 = vpop.permute.xlu0 %1289 }
 0xe1a   :  { %2729 = vmatmul.mubr.msk.f32.vlgmr.msra.gmra.mrb[12].mxu1 %vm98_vm1, %v1290_v11 }
 0xe1b   :  { %2944 = vmatpush3.bf16.msra.mxu1 %v3413_v5  ;;  %2750 = vmatprep.mubr.msk.f32.mxu1 %vm3256_vm0, %v3257_v1 }
 0xe1c   :  { %2945 = vmatprep.subr.bf16.mxu1 %v3255_v0 }
 0xe1e   :  { %v1365_v12 = vpop.permute.xlu1 %1364 }
 0xe1f   :  { %2947 = vmatpush3.bf16.msra.mxu1 %v3423_v8  ;;  %2740 = vmatmul.mubr.msk.f32.vlgmr.msra.gmra.mrb[14].mxu0 %vm98_vm1, %v1365_v12 }
 0xe20   :  { %2950 = vmatpush3.bf16.msra.mxu0 %v3438_v28  ;;  %2954 = vmatprep.subr.bf16.mxu1 %v3255_v0 }
 0xe21   :  { %2951 = vmatprep.subr.bf16.mxu0 %v3255_v0  ;;  %2761 = vmatprep.mubr.msk.f32.mxu0 %vm3256_vm0, %v3257_v1 }
 0xe22   :  { %2751 = vmatmul.mubr.msk.f32.vlgmr.msra.gmra.mrb[14].mxu1 %vm98_vm1, %v1365_v12 }
 0xe23   :  { %2956 = vmatpush3.bf16.msra.mxu1 %v3447_v36  ;;  %2772 = vmatprep.mubr.msk.f32.mxu1 %vm3256_vm0, %v3257_v1 }
 0xe24   :  { %2953 = vmatpush3.bf16.msra.mxu0 %v3445_v35  ;;  %2957 = vmatprep.subr.bf16.mxu1 %v3255_v0 }
 0xe25   :  { %2960 = vmatprep.subr.bf16.mxu0 %v3255_v0 }
 0xe27   :  { %2959 = vmatpush3.bf16.msra.mxu1 %v3451_v37 }
 0xe28   :  { %2966 = vmatprep.subr.bf16.mxu1 %v3255_v0 }
 0xeed   :  { %v1359_v13 = vpop.f32.mrb[12].mxu1 }
 0xeee   :  { %v2730_v14 = vpop.f32.mrb[13].mxu1 }
 0xef2   :  { %v1434_v15 = vpop.f32.mrb[14].mxu0 }
 0xef3   :  { %v1435_v16 = vadd.f32 %v1434_v15, %v1359_v13  ;;  %v2741_v17 = vpop.f32.mrb[15].mxu0 }
 0xef5   :  { %v1438_v19 = vadd.f32 %v3485_v47, %v1435_v16  ;;  %v1527_v20 = vpop.f32.mrb[14].mxu1 }
 0xef6   :  { %v1531_v21 = vadd.f32 %v1527_v20, %v1460_v18  ;;  %v2752_v22 = vpop.f32.mrb[15].mxu1 }
 0xef7   :  { %3053 = vtanh.f32 %v1438_v19 }
 0xef8   :  { %3055 = vtanh.f32 %v1531_v21 }
 0xf01   :  { %v3054_v23 = vpop.eup %3053 }
 0xf02   :  { %v3056_v24 = vpop.eup %3055  ;;  %1444 = vrot.lane.b32.xlu0 %v3054_v23, %s3258_s3  ;;  %v1440_v25 = vmul.f32 0.5, %v3054_v23 }
 0xf03   :  { %1537 = vrot.lane.b32.xlu1 %v3056_v24, %s3258_s3  ;;  %v1533_v26 = vmul.f32 0.5, %v3056_v24 }
 0xf04   :  { %v1441_v27 = vadd.f32 0.5, %v1440_v25 }
 0xf05   :  { %v1534_v29 = vadd.f32 0.5, %v1533_v26 }
 0xf06   :  { %v1442_v34 = vmul.f32 %v1441_v27, %v1188_v61 }
 0xf07   :  { %v1535_v38 = vmul.f32 %v1534_v29, %v1281_v2 }
 0xf74   :  { %v1445_v30 = vpop.permute.xlu0 %1444 }
 0xf75   :  { %v1538_v31 = vpop.permute.xlu1 %1537  ;;  %v1447_v32 = vmul.f32 %v1445_v30, %v1441_v27 }
 0xf76   :  { %v1540_v33 = vmul.f32 %v1538_v31, %v1534_v29 }
 0xf77   :  { %1449 = vrot.lane.b32.xlu0 %v1447_v32, %s3259_s19 }
 0xf78   :  { %1542 = vrot.lane.b32.xlu1 %v1540_v33, %s3259_s19 }
 0xfe9   :  { %v1450_v39 = vpop.permute.xlu0 %1449 }
 0xfea   :  { %v1543_v40 = vpop.permute.xlu1 %1542  ;;  %v1452_v41 = vadd.f32 %v1450_v39, %v1442_v34 }
 0xfeb   :  { %v3622_v42 = vadd.f32 %v1543_v40, %v1535_v38 }
 0xfec   :  { %3057 = vtanh.f32 %v1452_v41 }
 0xfed   :  { %3059 = vtanh.f32 %v3622_v42 }
 0xff6   :  { %v3058_v43 = vpop.eup %3057 }
 0xff7   :  { %v3060_v44 = vpop.eup %3059  ;;  %1455 = vrot.lane.b32.xlu0 %v3058_v43, %s3258_s3 }
 0xff8   :  { %1548 = vrot.lane.b32.xlu1 %v3060_v44, %s3258_s3 }
0x1069   :  { %v1456_v45 = vpop.permute.xlu0 %1455 }
0x106a   :  { %v1549_v46 = vpop.permute.xlu1 %1548  ;;  %v1458_v48 = vmul.f32 %v1456_v45, %v1441_v27 }
0x106b   :  { %v1551_v49 = vmul.f32 %v1549_v46, %v1534_v29  ;;  %v1988_v29 = vld [vmem:[#allocation2 + $0x38] sm:$0xff] }
0x106c   :  { %1553 = vrot.lane.b32.xlu0 %v1458_v48, %s3259_s19 }
0x106d   :  { %1628 = vrot.lane.b32.xlu1 %v1551_v49, %s3259_s19 }
0x10de   :  { %v1554_v50 = vpop.permute.xlu0 %1553 }
0x10df   :  { %v1629_v51 = vpop.permute.xlu1 %1628  ;;  %2762 = vmatmul.mubr.msk.f32.vlgmr.msra.gmra.mrb[16].mxu0 %vm98_vm1, %v1554_v50 }
0x10e0   :  { %2773 = vmatmul.mubr.msk.f32.vlgmr.msra.gmra.mrb[16].mxu1 %vm98_vm1, %v1629_v51  ;;  %2962 = vmatpush3.bf16.msra.mxu0 %v3413_v5 }
0x10e1   :  { %2963 = vmatprep.subr.bf16.mxu0 %v3255_v0  ;;  %2783 = vmatprep.mubr.msk.f32.mxu0 %vm3256_vm0, %v3257_v1 }
0x10e2   :  { %2968 = vmatpush3.bf16.msra.mxu1 %v3438_v28  ;;  %2794 = vmatprep.mubr.msk.f32.mxu1 %vm3256_vm0, %v3257_v1 }
0x10e3   :  { %2969 = vmatprep.subr.bf16.mxu1 %v3255_v0 }
0x10e4   :  { %2965 = vmatpush3.bf16.msra.mxu0 %v3423_v8 }
0x10e5   :  { %2972 = vmatprep.subr.bf16.mxu0 %v3255_v0 }
0x10e6   :  { %2971 = vmatpush3.bf16.msra.mxu1 %v3445_v35 }
0x10e7   :  { %2784 = vmatmul.mubr.msk.f32.vlgmr.msra.gmra.mrb[18].mxu0 %vm98_vm1, %v1629_v51  ;;  %2978 = vmatprep.subr.bf16.mxu1 %v3255_v0 }
0x10e8   :  { %2974 = vmatpush3.bf16.msra.mxu0 %v3447_v36  ;;  %2805 = vmatprep.mubr.msk.f32.mxu0 %vm3256_vm0, %v3257_v1 }
0x10e9   :  { %2975 = vmatprep.subr.bf16.mxu0 %v3255_v0 }
0x10ec   :  { %2977 = vmatpush3.bf16.msra.mxu0 %v3451_v37 }
0x10ed   :  { %2984 = vmatprep.subr.bf16.mxu0 %v3255_v0 }
0x11b2   :  { %v1623_v52 = vpop.f32.mrb[16].mxu0 }
0x11b3   :  { %v1698_v53 = vpop.f32.mrb[16].mxu1  ;;  %v2763_v54 = vpop.f32.mrb[17].mxu0 }
0x11b4   :  { %v1699_v55 = vadd.f32 %v1698_v53, %v1623_v52  ;;  %v2774_v56 = vpop.f32.mrb[17].mxu1 }
0x11b6   :  { %v1702_v57 = vadd.f32 %v3485_v47, %v1699_v55 }
0x11b8   :  { %3061 = vtanh.f32 %v1702_v57 }
0x11ba   :  { %v1791_v59 = vpop.f32.mrb[18].mxu0 }
0x11bb   :  { %v1795_v60 = vadd.f32 %v1791_v59, %v1724_v58  ;;  %v2785_v61 = vpop.f32.mrb[19].mxu0 }
0x11bd   :  { %3063 = vtanh.f32 %v1795_v60 }
0x11c2   :  { %v3062_v62 = vpop.eup %3061 }
0x11c3   :  { %1708 = vrot.lane.b32.xlu0 %v3062_v62, %s3258_s3  ;;  %v1704_v2 = vmul.f32 0.5, %v3062_v62 }
0x11c5   :  { %v1705_v3 = vadd.f32 0.5, %v1704_v2 }
0x11c7   :  { %v3064_v63 = vpop.eup %3063  ;;  %v1706_v12 = vmul.f32 %v1705_v3, %v1452_v41 }
0x11c8   :  { %1801 = vrot.lane.b32.xlu1 %v3064_v63, %s3258_s3  ;;  %v1797_v6 = vmul.f32 0.5, %v3064_v63 }
0x11ca   :  { %v1798_v9 = vadd.f32 0.5, %v1797_v6 }
0x11cc   :  { %v1799_v15 = vmul.f32 %v1798_v9, %v3622_v42 }
0x1235   :  { %v1709_v4 = vpop.permute.xlu0 %1708 }
0x1236   :  { %v1711_v7 = vmul.f32 %v1709_v4, %v1705_v3 }
0x1238   :  { %1713 = vrot.lane.b32.xlu0 %v1711_v7, %s3259_s19 }
0x123a   :  { %v1802_v10 = vpop.permute.xlu1 %1801 }
0x123b   :  { %v1804_v11 = vmul.f32 %v1802_v10, %v1798_v9 }
0x123d   :  { %1806 = vrot.lane.b32.xlu1 %v1804_v11, %s3259_s19 }
0x12aa   :  { %v1714_v13 = vpop.permute.xlu0 %1713 }
0x12ab   :  { %v1716_v14 = vadd.f32 %v1714_v13, %v1706_v12  ;;  %v2271_v12 = vld [vmem:[%s3771_s7] sm:$0xff]  ;;  %v2273_v13 = vld [vmem:[%s3771_s7 + $0x10] sm:$0xff] }
0x12ad   :  { %3065 = vtanh.f32 %v1716_v14 }
0x12af   :  { %v1807_v16 = vpop.permute.xlu1 %1806 }
0x12b0   :  { %v1809_v17 = vadd.f32 %v1807_v16, %v1799_v15  ;;  %v2274_v15 = vld [vmem:[%s3771_s7 + $0x18] sm:$0xff] }
0x12b1   :  { %v3000_v16 = vpack.c.bf16 %v2274_v15, %v2273_v13 }
0x12b2   :  { %3067 = vtanh.f32 %v1809_v17 }
0x12b7   :  { %v3066_v18 = vpop.eup %3065 }
0x12b8   :  { %1719 = vrot.lane.b32.xlu0 %v3066_v18, %s3258_s3 }
0x12bc   :  { %v3068_v19 = vpop.eup %3067 }
0x12bd   :  { %1812 = vrot.lane.b32.xlu1 %v3068_v19, %s3258_s3 }
0x132a   :  { %v1720_v20 = vpop.permute.xlu0 %1719 }
0x132b   :  { %v1722_v21 = vmul.f32 %v1720_v20, %v1705_v3 }
0x132d   :  { %1817 = vrot.lane.b32.xlu0 %v1722_v21, %s3259_s19 }
0x132f   :  { %v1813_v22 = vpop.permute.xlu1 %1812 }
0x1330   :  { %v1815_v23 = vmul.f32 %v1813_v22, %v1798_v9 }
0x1332   :  { %1892 = vrot.lane.b32.xlu1 %v1815_v23, %s3259_s19 }
0x139f   :  { %v1818_v24 = vpop.permute.xlu0 %1817 }
0x13a0   :  { %2795 = vmatmul.mubr.msk.f32.vlgmr.msra.gmra.mrb[18].mxu1 %vm98_vm1, %v1818_v24 }
0x13a1   :  { %2980 = vmatpush3.bf16.msra.mxu1 %v3413_v5  ;;  %2816 = vmatprep.mubr.msk.f32.mxu1 %vm3256_vm0, %v3257_v1 }
0x13a2   :  { %2981 = vmatprep.subr.bf16.mxu1 %v3255_v0 }
0x13a4   :  { %v1893_v25 = vpop.permute.xlu1 %1892 }
0x13a5   :  { %2983 = vmatpush3.bf16.msra.mxu1 %v3423_v8  ;;  %2806 = vmatmul.mubr.msk.f32.vlgmr.msra.gmra.mrb[20].mxu0 %vm98_vm1, %v1893_v25 }
0x13a6   :  { %2990 = vmatprep.subr.bf16.mxu1 %v3255_v0  ;;  %2986 = vmatpush3.bf16.msra.mxu0 %v3438_v28 }
0x13a7   :  { %2987 = vmatprep.subr.bf16.mxu0 %v3255_v0  ;;  %2827 = vmatprep.mubr.msk.f32.mxu0 %vm3256_vm0, %v3257_v1 }
0x13a8   :  { %2817 = vmatmul.mubr.msk.f32.vlgmr.msra.gmra.mrb[20].mxu1 %vm98_vm1, %v1893_v25 }
0x13a9   :  { %2992 = vmatpush3.bf16.msra.mxu1 %v3447_v36  ;;  %2838 = vmatprep.mubr.msk.f32.mxu1 %vm3256_vm0, %v3257_v1 }
0x13aa   :  { %2993 = vmatprep.subr.bf16.mxu1 %v3255_v0  ;;  %2989 = vmatpush3.bf16.msra.mxu0 %v3445_v35 }
0x13ab   :  { %2996 = vmatprep.subr.bf16.mxu0 %v3255_v0 }
0x13ad   :  { %2995 = vmatpush3.bf16.msra.mxu1 %v3451_v37 }
0x1473   :  { %v1887_v5 = vpop.f32.mrb[18].mxu1 }
0x1474   :  { %v2796_v8 = vpop.f32.mrb[19].mxu1 }
0x1478   :  { %v1962_v28 = vpop.f32.mrb[20].mxu0 }
0x1479   :  { %v1963_v26 = vadd.f32 %v1962_v28, %v1887_v5  ;;  %v2807_v27 = vpop.f32.mrb[21].mxu0 }
0x147b   :  { %v1966_v30 = vadd.f32 %v3485_v47, %v1963_v26  ;;  %v2055_v36 = vpop.f32.mrb[20].mxu1 }
0x147c   :  { %v2059_v31 = vadd.f32 %v2055_v36, %v1988_v29  ;;  %v2818_v32 = vpop.f32.mrb[21].mxu1 }
0x147d   :  { %3069 = vtanh.f32 %v1966_v30 }
0x147e   :  { %3071 = vtanh.f32 %v2059_v31 }
0x1487   :  { %v3070_v33 = vpop.eup %3069 }
0x1488   :  { %v3072_v34 = vpop.eup %3071  ;;  %1972 = vrot.lane.b32.xlu0 %v3070_v33, %s3258_s3  ;;  %v1968_v35 = vmul.f32 0.5, %v3070_v33 }
0x1489   :  { %2065 = vrot.lane.b32.xlu1 %v3072_v34, %s3258_s3  ;;  %v2061_v37 = vmul.f32 0.5, %v3072_v34 }
0x148a   :  { %v1969_v38 = vadd.f32 0.5, %v1968_v35 }
0x148b   :  { %v2062_v39 = vadd.f32 0.5, %v2061_v37 }
0x148c   :  { %v1970_v44 = vmul.f32 %v1969_v38, %v1716_v14 }
0x148d   :  { %v2063_v45 = vmul.f32 %v2062_v39, %v1809_v17 }
0x14fa   :  { %v1973_v40 = vpop.permute.xlu0 %1972 }
0x14fb   :  { %v2066_v41 = vpop.permute.xlu1 %2065  ;;  %v1975_v42 = vmul.f32 %v1973_v40, %v1969_v38 }
0x14fc   :  { %v2068_v43 = vmul.f32 %v2066_v41, %v2062_v39 }
0x14fd   :  { %1977 = vrot.lane.b32.xlu0 %v1975_v42, %s3259_s19 }
0x14fe   :  { %2070 = vrot.lane.b32.xlu1 %v2068_v43, %s3259_s19 }
0x156f   :  { %v1978_v46 = vpop.permute.xlu0 %1977 }
0x1570   :  { %v2071_v48 = vpop.permute.xlu1 %2070  ;;  %v1980_v49 = vadd.f32 %v1978_v46, %v1970_v44 }
0x1571   :  { %v2073_v50 = vadd.f32 %v2071_v48, %v2063_v45 }
0x1572   :  { %3073 = vtanh.f32 %v1980_v49 }
0x1573   :  { %3075 = vtanh.f32 %v2073_v50 }
0x157c   :  { %v3074_v51 = vpop.eup %3073 }
0x157d   :  { %v3076_v52 = vpop.eup %3075  ;;  %1983 = vrot.lane.b32.xlu0 %v3074_v51, %s3258_s3 }
0x157e   :  { %2076 = vrot.lane.b32.xlu1 %v3076_v52, %s3258_s3 }
0x15ef   :  { %v1984_v53 = vpop.permute.xlu0 %1983 }
0x15f0   :  { %v2077_v54 = vpop.permute.xlu1 %2076  ;;  %v1986_v55 = vmul.f32 %v1984_v53, %v1969_v38 }
0x15f1   :  { %v2079_v56 = vmul.f32 %v2077_v54, %v2062_v39 }
0x15f2   :  { %2081 = vrot.lane.b32.xlu0 %v1986_v55, %s3259_s19 }
0x15f3   :  { %2156 = vrot.lane.b32.xlu1 %v2079_v56, %s3259_s19 }
0x1664   :  { %v2082_v57 = vpop.permute.xlu0 %2081 }
0x1665   :  { %v2157_v58 = vpop.permute.xlu1 %2156  ;;  %2828 = vmatmul.mubr.msk.f32.vlgmr.msra.gmra.mrb[22].mxu0 %vm98_vm1, %v2082_v57 }
0x1666   :  { %2252 = vst.msk [vmem:[#allocation11] sm:$0xff] %vm98_vm1, %v2157_v58  ;;  %2839 = vmatmul.mubr.msk.f32.vlgmr.msra.gmra.mrb[22].mxu1 %vm98_vm1, %v2157_v58  ;;  %2849 = vmatprep.mubr.msk.f32.mxu0 %vm3256_vm0, %v3257_v1 }
0x1738   :  { %v2151_v59 = vpop.f32.mrb[22].mxu0 }
0x1739   :  { %v2226_v60 = vpop.f32.mrb[22].mxu1  ;;  %v2829_v61 = vpop.f32.mrb[23].mxu0 }
0x173a   :  { %v2227_v62 = vadd.f32 %v2226_v60, %v2151_v59  ;;  %v2840_v63 = vpop.f32.mrb[23].mxu1 }
0x173c   :  { %v2230_v2 = vadd.f32 %v3485_v47, %v2227_v62  ;;  %v2272_v47 = vld [vmem:[%s3771_s7 + $0x8] sm:$0xff]  ;;  %s3261_s7 = smov [#allocation11]  }
0x173d   :  { %v2997_v14 = vpack.c.bf16 %v2272_v47, %v2271_v12  ;;  %s2392_s27 = sshll.u32 %s3261_s7, 4  ;;  %s2393_s27 = int_to_ptr.vmem [resolvable:$true] %s2392_s27 }
0x173e   :  { %3077 = vtanh.f32 %v2230_v2  ;;  %s3173_s12 = scalar_lea.vmem %s2393_s27, 256  ;;  %p3178_p5 = scmp.lt.s32.totalorder %s2393_s27, %s2393_s27 }
0x173f   :  { %2998 = vmatpush3.bf16.msra.mxu0 %v2997_v14  ;;  %p3174_p4 = scmp.ne.s32.totalorder %s2393_s27, %s3173_s12  ;;  %p3179_p6 = scmp.lt.s32.totalorder %s3173_s12, %s3173_s12 }
0x1740   :  { %2999 = vmatprep.subr.bf16.mxu0 %v3255_v0 }
0x1741   :  { %p3180_p7 = por %p3179_p6, %p3178_p5 }
0x1743   :  { %3001 = vmatpush3.bf16.msra.mxu0 %v3000_v16  ;;  %p3181_p8 = pnand %p3180_p7, %p3174_p4 }
0x1748   :  { %v3078_v3 = vpop.eup %3077 }
0x1749   :  { %2236 = vrot.lane.b32.xlu0 %v3078_v3, %s3258_s3  ;;  %v2232_v4 = vmul.f32 0.5, %v3078_v3 }
0x174b   :  { %v2233_v6 = vadd.f32 0.5, %v2232_v4 }
0x174d   :  { %v2234_v10 = vmul.f32 %v2233_v6, %v1980_v49 }
0x17bb   :  { %v2237_v7 = vpop.permute.xlu0 %2236 }
0x17bc   :  { %v2239_v9 = vmul.f32 %v2237_v7, %v2233_v6 }
0x17be   :  { %2241 = vrot.lane.b32.xlu1 %v2239_v9, %s3259_s19 }
0x1830   :  { %v2242_v11 = vpop.permute.xlu1 %2241 }
0x1831   :  { %v2244_v1 = vadd.f32 %v2242_v11, %v2234_v10 }
0x1833   :  { %3079 = vtanh.f32 %v2244_v1 }
0x183d   :  { %v3080_v17 = vpop.eup %3079 }
0x183e   :  { %2247 = vrot.lane.b32.xlu0 %v3080_v17, %s3258_s3 }
0x1842   :  { %2254 = vrot.lane.b32.xlu0 %v2073_v50, %s3260_s5 }
0x18b0   :  { %v2248_v18 = vpop.permute.xlu0 %2247 }
0x18b1   :  { %v2250_v19 = vmul.f32 %v2248_v18, %v2233_v6 }
0x18b3   :  { %2259 = vrot.lane.b32.xlu1 %v2250_v19, %s3259_s19 }
0x18b4   :  { %v2255_v20 = vpop.permute.xlu0 %2254 }
0x18b5   :  { %2257 = vst.msk [vmem:[#allocation13] sm:$0xff] %vm98_vm1, %v2255_v20 }
0x18b7   :  { %2264 = vrot.lane.b32.xlu1 %v2244_v1, %s3260_s5 }
0x1925   :  { %v2260_v21 = vpop.permute.xlu1 %2259 }
0x1926   :  { %2262 = vst.msk [vmem:[#allocation11 + $0x8] sm:$0xff] %vm98_vm1, %v2260_v21  ;;  %2850 = vmatmul.mubr.msk.f32.vlgmr.msra.gmra.mrb[24].mxu0 %vm98_vm1, %v2260_v21 }
0x1929   :  { %v2265_v0 = vpop.permute.xlu1 %2264 }
0x192a   :  { %2267 = vst.msk [vmem:[#allocation13 + $0x8] sm:$0xff] %vm98_vm1, %v2265_v0 }
0x192b   :  { %3184 = shalt.err (!%p3181_p8)
}
0x192c   :  { %s3185_s15 = scalar_lea.hbm %s3774_s10, 256 }
0x192d   :  { %p3186_p9 = scmp.ne.s32.totalorder %s3774_s10, %s3185_s15  ;;  %p3189_p10 = scmp.lt.u32.totalorder %s3185_s15, %s3774_s10 }
0x192f   :  { %p3191_p11 = pnand %p3189_p10, %p3186_p9 }
0x1931   :  { %3194 = shalt.err (!%p3191_p11)
}
0x1932   :  { %2398 = dma.vmem_to_hbm [thread:$0]  %s2393_s27, 256, %s3774_s10, [#allocation12], %s3251_s29, %s3251_s29, %s3252_s30  }
0x1933   :  { %s3262_s21 = smov [#allocation13]  }
0x1934   :  { %s2404_s22 = sshll.u32 %s3262_s21, 4  ;;  %s2405_s22 = int_to_ptr.vmem [resolvable:$true] %s2404_s22 }
0x1935   :  { %s3195_s1 = scalar_lea.vmem %s2405_s22, 256  ;;  %p3200_p13 = scmp.lt.s32.totalorder %s2405_s22, %s2405_s22 }
0x1936   :  { %p3196_p12 = scmp.ne.s32.totalorder %s2405_s22, %s3195_s1  ;;  %p3201_p0 = scmp.lt.s32.totalorder %s3195_s1, %s3195_s1 }
0x1938   :  { %p3202_p1 = por %p3201_p0, %p3200_p13 }
0x193a   :  { %p3203_p2 = pnand %p3202_p1, %p3196_p12 }
0x193c   :  { %3206 = shalt.err (!%p3203_p2)
}
0x193d   :  { %s3207_s2 = scalar_lea.hbm %s3775_s11, 256 }
0x193e   :  { %p3208_p3 = scmp.ne.s32.totalorder %s3775_s11, %s3207_s2  ;;  %p3211_p4 = scmp.lt.u32.totalorder %s3207_s2, %s3775_s11 }
0x1940   :  { %p3213_p5 = pnand %p3211_p4, %p3208_p3 }
0x1942   :  { %3216 = shalt.err (!%p3213_p5)
}
0x1943   :  { %2410 = dma.vmem_to_hbm [thread:$0]  %s2405_s22, 256, %s3775_s11, [#allocation12], %s3251_s29, %s3251_s29, %s3252_s30   ;;  %vm2354_vm2 = vcmask 39936  }
0x1944   :  { %v2450_v22 = vld [vmem:[%s3772_s8] ss:$0 sm:$0xff]  ;;  %s3263_s8 = smov [#allocation10]  }
0x1945   :  { %s2383_s11 = sshll.u32 %s3263_s8, 4  ;;  %s2384_s11 = int_to_ptr.vmem [resolvable:$true] %s2383_s11 }
0x1946   :  { %s3217_s29 = scalar_lea.vmem %s2384_s11, 128  ;;  %p3222_p7 = scmp.lt.s32.totalorder %s2384_s11, %s2384_s11 }
0x1947   :  { %p3218_p6 = scmp.ne.s32.totalorder %s2384_s11, %s3217_s29  ;;  %p3223_p8 = scmp.lt.s32.totalorder %s3217_s29, %s3217_s29 }
0x1949   :  { %p3224_p9 = por %p3223_p8, %p3222_p7 }
0x194b   :  { %p3225_p10 = pnand %p3224_p9, %p3218_p6 }
0x19f9   :  { %v2350_v23 = vpop.f32.mrb[24].mxu0 }
0x19fa   :  { %v2351_v24 = vadd.f32 %v2450_v22, %v2350_v23  ;;  %v2851_v25 = vpop.f32.mrb[25].mxu0 }
0x19fc   :  { %v2355_v5 = vsel %vm2354_vm2, %v2351_v24, -inf }
0x19fd   :  { %v2356_v8 = vrot.slane %v2355_v5, 4 }
0x19ff   :  { %v2357_v28 = vmax.f32 %v2355_v5, %v2356_v8 }
0x1a01   :  { %v2358_v26 = vrot.slane %v2357_v28, 2 }
0x1a03   :  { %v2359_v27 = vmax.f32 %v2357_v28, %v2358_v26 }
0x1a05   :  { %v2360_v29 = vrot.slane %v2359_v27, 1 }
0x1a07   :  { %v2361_v30 = vmax.f32 %v2359_v27, %v2360_v29 }
0x1a09   :  { %v2362_v36 = vsub.f32 %v2351_v24, %v2361_v30 }
0x1a0b   :  { %v2363_v31 = vmul.f32 1.442695, %v2362_v36 }
0x1a0d   :  { %3081 = vpow2.f32 %v2363_v31 }
0x1a17   :  { %v3082_v32 = vpop.eup %3081 }
0x1a18   :  { %v2365_v33 = vsel %vm2354_vm2, %v3082_v32, 0.0 }
0x1a19   :  { %v2366_v34 = vrot.slane %v2365_v33, 4 }
0x1a1b   :  { %v2367_v35 = vadd.f32 %v2366_v34, %v2365_v33 }
0x1a1d   :  { %v2368_v37 = vrot.slane %v2367_v35, 2 }
0x1a1f   :  { %v2369_v38 = vadd.f32 %v2368_v37, %v2367_v35 }
0x1a21   :  { %v2370_v39 = vrot.slane %v2369_v38, 1 }
0x1a23   :  { %v2371_v40 = vadd.f32 %v2370_v39, %v2369_v38 }
0x1a25   :  { %3083 = vlog2.f32 %v2371_v40 }
0x1a2f   :  { %v3084_v41 = vpop.eup %3083 }
0x1a30   :  { %v2373_v42 = vmul.f32 0.6931472, %v3084_v41 }
0x1a32   :  { %v2374_v43 = vadd.f32 %v2373_v42, %v2361_v30 }
0x1a34   :  { %v2375_v44 = vsub.f32 %v2351_v24, %v2374_v43 }
0x1a36   :  { %2376 = vst.msk [vmem:[#allocation10] sm:$0xff] %vm2354_vm2, %v2375_v44 }
0x1a37   :  { %3228 = shalt.err (!%p3225_p10)
}
0x1a38   :  { %s3229_s27 = scalar_lea.hbm %s3773_s9, 128 }
0x1a39   :  { %p3230_p11 = scmp.ne.s32.totalorder %s3773_s9, %s3229_s27  ;;  %p3233_p12 = scmp.lt.u32.totalorder %s3229_s27, %s3773_s9 }
0x1a3b   :  { %p3235_p13 = pnand %p3233_p12, %p3230_p11 }
0x1a3d   :  { %3238 = shalt.err (!%p3235_p13)
}
0x1a3e   :  { %2386 = dma.vmem_to_hbm [thread:$0]  %s2384_s11, 128, %s3773_s9, [#allocation4]  }
0x1a3f   :  { %3245 = dma.done.wait [#allocation4], 128  }
0x1a40   :  { %3246 = vsyncadd [#allocation4], 4294967168 }
0x1a41   :  { %3247 = dma.done.wait [#allocation12], 512  }
0x1a42   :  { %3248 = vsyncadd [#allocation12], 4294966784 }
0x1a43   :  { %2420 = vsyncpa [#allocation3], 1 }
0x1a44   :  { %2421 = vsyncpa [#allocation6], 1 }
0x1a45   :  { %2422 = vsyncpa [#allocation9], 1 }
0x1a46   :  { %2423 = vsyncpa [#allocation4], 1 }
0x1a47   :  { %2424 = vsyncpa [#allocation12], 1 }

</bundles_post_ra>
